<compile_context>
chip_gen: v7x
topology: tpu7x:2x2x1
jax: 0.10.0
libtpu: 0.0.40
codegen_flags: <defaults>
</compile_context>

<pallas_src>
import functools

import jax
import jax.numpy as jnp
from jax.experimental import pallas as pl
from jax.experimental.pallas import tpu as pltpu

LANE = 128                       # pad all feature dims to a multiple of this
SUBLANE = 8
VMEM_LIMIT = 32 * 1024 * 1024    # explicit scoped-VMEM budget (safe on v5e/v6e/v7x)


def _round_up(x, m):
    return (x + m - 1) // m * m


# ----------------------------------------------------------------------------
# Pallas kernels
# ----------------------------------------------------------------------------
def _gcn_layer_kernel(a_ref, x_ref, w_ref, b_ref, o_ref, acc_ref):
    """One GCN layer: out = relu((A_hat @ X) @ W + b), tiled over A_hat.

    grid = (row tiles of A_hat, k tiles of the A_hat/X contraction).
    acc_ref keeps the (tm, Fin) partial aggregation in f32 across the k axis.
    """
    k = pl.program_id(1)

    @pl.when(k == 0)
    def _init():
        acc_ref[...] = jnp.zeros_like(acc_ref)

    acc_ref[...] += jnp.dot(a_ref[...], x_ref[...],
                            preferred_element_type=jnp.float32)

    @pl.when(k == pl.num_programs(1) - 1)
    def _finalize():
        axw = jnp.dot(acc_ref[...].astype(jnp.bfloat16), w_ref[...],
                      preferred_element_type=jnp.float32)
        o_ref[...] = jnp.maximum(axw + b_ref[...], 0.0).astype(o_ref.dtype)


def _gcn3_pool_head_kernel(a_ref, h_ref, w3_ref, b3_ref, p_ref,
                           w1_ref, b1_ref, w2_ref, b2_ref,
                           o_ref, agg_ref, pool_ref, *, out_dim):
    """Fused: conv3 + ReLU + global_mean_pool + fc1 + ReLU + fc2 + log_softmax.

    grid = (row tiles of A_hat, k tiles of the A_hat contraction).
    agg_ref : (tm, F2)   f32  partial A_hat @ H2 for the current row tile.
    pool_ref: (B,  F3)   f32  pooled = P @ H3, accumulated across row tiles.
    """
    i = pl.program_id(0)
    k = pl.program_id(1)
    ni = pl.num_programs(0)
    nk = pl.num_programs(1)

    @pl.when(jnp.logical_and(i == 0, k == 0))
    def _init_pool():
        pool_ref[...] = jnp.zeros_like(pool_ref)

    @pl.when(k == 0)
    def _init_agg():
        agg_ref[...] = jnp.zeros_like(agg_ref)

    agg_ref[...] += jnp.dot(a_ref[...], h_ref[...],
                            preferred_element_type=jnp.float32)

    @pl.when(k == nk - 1)
    def _layer_epilogue():
        # H3 row tile (never written to HBM), folded straight into the pool.
        h3 = jnp.dot(agg_ref[...].astype(jnp.bfloat16), w3_ref[...],
                     preferred_element_type=jnp.float32)
        h3 = jnp.maximum(h3 + b3_ref[...], 0.0)
        pool_ref[...] += jnp.dot(p_ref[...], h3.astype(jnp.bfloat16),
                                 preferred_element_type=jnp.float32)

    @pl.when(jnp.logical_and(i == ni - 1, k == nk - 1))
    def _head():
        pooled = pool_ref[...].astype(jnp.bfloat16)
        h1 = jnp.dot(pooled, w1_ref[...], preferred_element_type=jnp.float32)
        h1 = jnp.maximum(h1 + b1_ref[...], 0.0)
        logits = jnp.dot(h1.astype(jnp.bfloat16), w2_ref[...],
                         preferred_element_type=jnp.float32) + b2_ref[...]
        # log_softmax over the valid (un-padded) output columns only.
        col = jax.lax.broadcasted_iota(jnp.int32, logits.shape, 1)
        valid = col < out_dim
        logits = jnp.where(valid, logits, -1e30)
        m = jnp.max(logits, axis=1, keepdims=True)
        z = logits - m
        lse = jnp.log(jnp.sum(jnp.where(valid, jnp.exp(z), 0.0),
                              axis=1, keepdims=True))
        o_ref[...] = (z - lse).astype(o_ref.dtype)


# ----------------------------------------------------------------------------
# pallas_call wrappers
# ----------------------------------------------------------------------------
def _gcn_layer(a_hat, x, w, b, *, tm, tk):
    n_pad = a_hat.shape[0]
    fin = x.shape[1]
    fout = w.shape[1]
    grid = (n_pad // tm, n_pad // tk)
    return pl.pallas_call(
        _gcn_layer_kernel,
        out_shape=jax.ShapeDtypeStruct((n_pad, fout), jnp.bfloat16),
        grid=grid,
        in_specs=[
            pl.BlockSpec((tm, tk), lambda i, k: (i, k)),      # A_hat tile
            pl.BlockSpec((tk, fin), lambda i, k: (k, 0)),     # X row-panel
            pl.BlockSpec((fin, fout), lambda i, k: (0, 0)),   # W (resident)
            pl.BlockSpec((1, fout), lambda i, k: (0, 0)),     # bias
        ],
        out_specs=pl.BlockSpec((tm, fout), lambda i, k: (i, 0)),
        scratch_shapes=[pltpu.VMEM((tm, fin), jnp.float32)],
        compiler_params=pltpu.CompilerParams(
            dimension_semantics=("parallel", "arbitrary"),
            vmem_limit_bytes=VMEM_LIMIT),
    )(a_hat, x, w, b)


def _gcn3_pool_head(a_hat, h2, w3, b3, p_pool, w1, b1, w2, b2, *, out_dim, tm, tk):
    n_pad = a_hat.shape[0]
    f2 = h2.shape[1]
    f3 = w3.shape[1]
    hdim = w1.shape[1]
    odim = w2.shape[1]
    b_pad = p_pool.shape[0]
    grid = (n_pad // tm, n_pad // tk)
    kernel = functools.partial(_gcn3_pool_head_kernel, out_dim=out_dim)
    return pl.pallas_call(
        kernel,
        out_shape=jax.ShapeDtypeStruct((b_pad, odim), jnp.float32),
        grid=grid,
        in_specs=[
            pl.BlockSpec((tm, tk), lambda i, k: (i, k)),      # A_hat tile
            pl.BlockSpec((tk, f2), lambda i, k: (k, 0)),      # H2 row-panel
            pl.BlockSpec((f2, f3), lambda i, k: (0, 0)),      # conv3 W (resident)
            pl.BlockSpec((1, f3), lambda i, k: (0, 0)),       # conv3 b
            pl.BlockSpec((b_pad, tm), lambda i, k: (0, i)),   # P columns of row tile
            pl.BlockSpec((f3, hdim), lambda i, k: (0, 0)),    # fc1 W (resident)
            pl.BlockSpec((1, hdim), lambda i, k: (0, 0)),     # fc1 b
            pl.BlockSpec((hdim, odim), lambda i, k: (0, 0)),  # fc2 W (resident)
            pl.BlockSpec((1, odim), lambda i, k: (0, 0)),     # fc2 b
        ],
        out_specs=pl.BlockSpec((b_pad, odim), lambda i, k: (0, 0)),
        scratch_shapes=[pltpu.VMEM((tm, f2), jnp.float32),
                        pltpu.VMEM((b_pad, f3), jnp.float32)],
        compiler_params=pltpu.CompilerParams(
            # pooled accumulator is carried across row tiles -> no "parallel" here
            dimension_semantics=("arbitrary", "arbitrary"),
            vmem_limit_bytes=VMEM_LIMIT),
    )(a_hat, h2, w3, b3, p_pool, w1, b1, w2, b2)


# ----------------------------------------------------------------------------
# Plain-JAX glue (hoisted, once-per-graph-structure precompute)
# ----------------------------------------------------------------------------
def _graph_operators_f32(edge_index, batch, num_nodes, num_graphs):
    """Dense normalized adjacency (PyG GCNConv semantics) + mean-pool matrix."""
    src, dst = edge_index[0], edge_index[1]
    a = jnp.zeros((num_nodes, num_nodes), jnp.float32)
    # PyG GCNConv (flow='source_to_target') aggregates src features INTO dst:
    a = a.at[dst, src].set(1.0)
    diag = jnp.arange(num_nodes)
    a = a.at[diag, diag].set(1.0)          # self-loops, no double-add
    deg = jnp.sum(a, axis=1)               # in-degree + 1
    dinv = jnp.where(deg > 0, jax.lax.rsqrt(deg), 0.0)
    a_hat = dinv[:, None] * a * dinv[None, :]

    onehot = (batch[None, :] == jnp.arange(num_graphs)[:, None]).astype(jnp.float32)
    counts = jnp.maximum(jnp.sum(onehot, axis=1, keepdims=True), 1.0)
    p_pool = onehot / counts
    return a_hat, p_pool


def build_graph_operators(edge_index, batch, num_nodes, num_graphs, n_pad, b_pad):
    a_hat, p_pool = _graph_operators_f32(edge_index, batch, num_nodes, num_graphs)
    a_hat_pad = jnp.zeros((n_pad, n_pad), jnp.bfloat16)
    a_hat_pad = a_hat_pad.at[:num_nodes, :num_nodes].set(a_hat.astype(jnp.bfloat16))
    p_pad = jnp.zeros((b_pad, n_pad), jnp.bfloat16)
    p_pad = p_pad.at[:num_graphs, :num_nodes].set(p_pool.astype(jnp.bfloat16))
    return a_hat_pad, p_pad


def init_params(key, input_dim, hidden_dim, output_dim):
    ks = jax.random.split(key, 10)

    def dense(k, fan_in, fan_out):
        scale = 1.0 / jnp.sqrt(jnp.float32(fan_in))
        return jax.random.uniform(k, (fan_in, fan_out), jnp.float32, -scale, scale)

    return {
        "w1": dense(ks[0], input_dim, hidden_dim),
        "b1": jax.random.uniform(ks[1], (1, hidden_dim), jnp.float32, -0.1, 0.1),
        "w2": dense(ks[2], hidden_dim, hidden_dim * 2),
        "b2": jax.random.uniform(ks[3], (1, hidden_dim * 2), jnp.float32, -0.1, 0.1),
        "w3": dense(ks[4], hidden_dim * 2, hidden_dim),
        "b3": jax.random.uniform(ks[5], (1, hidden_dim), jnp.float32, -0.1, 0.1),
        "fc1_w": dense(ks[6], hidden_dim, hidden_dim),
        "fc1_b": jax.random.uniform(ks[7], (1, hidden_dim), jnp.float32, -0.1, 0.1),
        "fc2_w": dense(ks[8], hidden_dim, output_dim),
        "fc2_b": jax.random.uniform(ks[9], (1, output_dim), jnp.float32, -0.1, 0.1),
    }


def _pad2(x, rows, cols, dtype):
    out = jnp.zeros((rows, cols), dtype)
    return out.at[: x.shape[0], : x.shape[1]].set(x.astype(dtype))


def pad_params(params):
    """Zero-pad all params to lane-dense shapes. Weights -> bf16, biases -> f32."""
    padded = {}
    for name, v in params.items():
        is_bias = v.shape[0] == 1
        rows = 1 if is_bias else _round_up(v.shape[0], LANE)
        cols = _round_up(v.shape[1], LANE)
        dtype = jnp.float32 if is_bias else jnp.bfloat16
        padded[name] = _pad2(v, rows, cols, dtype)
    return padded


# ----------------------------------------------------------------------------
# Forward pass
# ----------------------------------------------------------------------------
@functools.partial(jax.jit, static_argnames=("out_dim", "tm", "tk"))
def gcn_forward(pp, x_pad, a_hat_pad, p_pool_pad, *, out_dim, tm=128, tk=128):
    h = _gcn_layer(a_hat_pad, x_pad, pp["w1"], pp["b1"], tm=tm, tk=tk)   # relu(conv1)
    h = _gcn_layer(a_hat_pad, h, pp["w2"], pp["b2"], tm=tm, tk=tk)       # relu(conv2)
    # relu(conv3) + global_mean_pool + fc1 + relu + fc2 + log_softmax, fused
    return _gcn3_pool_head(a_hat_pad, h, pp["w3"], pp["b3"], p_pool_pad,
                           pp["fc1_w"], pp["fc1_b"], pp["fc2_w"], pp["fc2_b"],
                           out_dim=out_dim, tm=tm, tk=tk)


def _reference_forward(params, x, edge_index, batch, num_nodes, num_graphs):
    """Pure-JAX f32 reference matching the PyTorch module's forward."""
    a_hat, p_pool = _graph_operators_f32(edge_index, batch, num_nodes, num_graphs)
    h = jax.nn.relu(a_hat @ (x @ params["w1"]) + params["b1"])
    h = jax.nn.relu(a_hat @ (h @ params["w2"]) + params["b2"])
    h = jax.nn.relu(a_hat @ (h @ params["w3"]) + params["b3"])
    pooled = p_pool @ h
    h = jax.nn.relu(pooled @ params["fc1_w"] + params["fc1_b"])
    logits = h @ params["fc2_w"] + params["fc2_b"]
    return jax.nn.log_softmax(logits, axis=1)


# ----------------------------------------------------------------------------
# Demo
# ----------------------------------------------------------------------------
if __name__ == "__main__":
    INPUT_DIM, HIDDEN_DIM, OUTPUT_DIM = 8, 16, 4
    NUM_NODES, NUM_GRAPHS = 16, 2                   # two graphs of 8 nodes each

    key = jax.random.PRNGKey(0)
    k_feat, k_param = jax.random.split(key)

    x = jax.random.normal(k_feat, (NUM_NODES, INPUT_DIM), jnp.float32)

    # Deterministic edges: a bidirectional ring per graph plus two one-directional
    # chords (so A_hat is asymmetric and the src->dst orientation is exercised).
    edges = []
    for g in range(NUM_GRAPHS):
        base = g * (NUM_NODES // NUM_GRAPHS)
        size = NUM_NODES // NUM_GRAPHS
        for i in range(size):
            u = base + i
            v = base + (i + 1) % size
            edges.append((u, v))
            edges.append((v, u))
        edges.append((base, base + size // 2))
        edges.append((base + 1, base + size - 1))
    edge_index = jnp.array(edges, dtype=jnp.int32).T           # (2, E)
    batch = jnp.repeat(jnp.arange(NUM_GRAPHS, dtype=jnp.int32),
                       NUM_NODES // NUM_GRAPHS)                 # (N,)

    # Tile sizes (TM == TK): 128 for this toy graph; bump to 256/512 for big N
    # (sized for v7x's 64 MiB VMEM — do not assume v6e's 128 MiB).
    TM = TK = 128
    n_pad = _round_up(max(NUM_NODES, TM), TM)
    b_pad = _round_up(NUM_GRAPHS, SUBLANE)
    in_pad = _round_up(INPUT_DIM, LANE)

    # Hoisted, once-per-graph-structure precompute (not in the per-forward path).
    a_hat_pad, p_pool_pad = build_graph_operators(
        edge_index, batch, NUM_NODES, NUM_GRAPHS, n_pad, b_pad)
    x_pad = _pad2(x, n_pad, in_pad, jnp.bfloat16)

    params = init_params(k_param, INPUT_DIM, HIDDEN_DIM, OUTPUT_DIM)
    pp = pad_params(params)

    out_pad = gcn_forward(pp, x_pad, a_hat_pad, p_pool_pad,
                          out_dim=OUTPUT_DIM, tm=TM, tk=TK)
    jax.block_until_ready(out_pad)
    out = out_pad[:NUM_GRAPHS, :OUTPUT_DIM]

    assert out.shape == (NUM_GRAPHS, OUTPUT_DIM)
    assert bool(jnp.all(jnp.isfinite(out)))
    # log_softmax rows should exponentiate-sum to ~1 over the valid classes.
    assert jnp.allclose(jnp.sum(jnp.exp(out), axis=1), 1.0, atol=1e-3)
    # Pure-JAX f32 reference check (kernel runs in bf16 -> loose tolerance).
    ref = _reference_forward(params, x, edge_index, batch, NUM_NODES, NUM_GRAPHS)
    assert jnp.allclose(out, ref, atol=0.1), (out, ref)

    print("KERNEL_OK")
</pallas_src>

<mosaic_0001>
module attributes {stable_mosaic.version = 11 : i64} {
  func.func @_gcn3_pool_head_kernel(%arg0: i32, %arg1: i32, %arg2: memref<128x128xbf16, #tpu.memory_space<vmem>>, %arg3: memref<128x128xbf16, #tpu.memory_space<vmem>>, %arg4: memref<128x128xbf16, #tpu.memory_space<vmem>>, %arg5: memref<1x128xf32, #tpu.memory_space<vmem>>, %arg6: memref<8x128xbf16, #tpu.memory_space<vmem>>, %arg7: memref<128x128xbf16, #tpu.memory_space<vmem>>, %arg8: memref<1x128xf32, #tpu.memory_space<vmem>>, %arg9: memref<128x128xbf16, #tpu.memory_space<vmem>>, %arg10: memref<1x128xf32, #tpu.memory_space<vmem>>, %arg11: memref<8x128xf32, #tpu.memory_space<vmem>>, %arg12: memref<128x128xf32, #tpu.memory_space<vmem>>, %arg13: memref<8x128xf32, #tpu.memory_space<vmem>>) attributes {dimension_semantics = [#tpu.dimension_semantics<arbitrary>, #tpu.dimension_semantics<arbitrary>], iteration_bounds = array<i64: 1, 1>, scalar_prefetch = 0 : i64, scratch_operands = 2 : i64, tpu.core_type = #tpu.core_type<tc>, window_params = [{transform_indices = @transform_0, window_bounds = array<i64: 128, 128>}, {transform_indices = @transform_1, window_bounds = array<i64: 128, 128>}, {pipeline_mode = #tpu.pipeline_mode<synchronous>, transform_indices = @transform_2, window_bounds = array<i64: 128, 128>}, {pipeline_mode = #tpu.pipeline_mode<synchronous>, transform_indices = @transform_3, window_bounds = array<i64: 1, 128>}, {transform_indices = @transform_4, window_bounds = array<i64: 8, 128>}, {pipeline_mode = #tpu.pipeline_mode<synchronous>, transform_indices = @transform_5, window_bounds = array<i64: 128, 128>}, {pipeline_mode = #tpu.pipeline_mode<synchronous>, transform_indices = @transform_6, window_bounds = array<i64: 1, 128>}, {pipeline_mode = #tpu.pipeline_mode<synchronous>, transform_indices = @transform_7, window_bounds = array<i64: 128, 128>}, {pipeline_mode = #tpu.pipeline_mode<synchronous>, transform_indices = @transform_8, window_bounds = array<i64: 1, 128>}, {pipeline_mode = #tpu.pipeline_mode<synchronous>, transform_indices = @transform_9, window_bounds = array<i64: 8, 128>}]} {
    %c0_i32 = arith.constant 0 : i32
    %0 = arith.cmpi eq, %arg0, %c0_i32 : i32
    %c0_i32_0 = arith.constant 0 : i32
    %1 = arith.cmpi eq, %arg1, %c0_i32_0 : i32
    %2 = arith.andi %0, %1 : i1
    %3 = arith.extui %2 : i1 to i32
    %c0_i32_1 = arith.constant 0 : i32
    %4 = arith.cmpi ne, %3, %c0_i32_1 : i32
    scf.if %4 {
      %cst_16 = arith.constant 0.000000e+00 : f32
      %22 = vector.broadcast %cst_16 : f32 to vector<8x128xf32>
      %c0_17 = arith.constant 0 : index
      %c0_18 = arith.constant 0 : index
      %23 = vector.load %arg13[%c0_17, %c0_18] : memref<8x128xf32, #tpu.memory_space<vmem>>, vector<8x128xf32>
      tpu.vector_store %arg13[%c0_17, %c0_18], %22 {strides = array<i32>} : memref<8x128xf32, #tpu.memory_space<vmem>>, vector<8x128xf32>,
    } else {
    }
    %c0_i32_2 = arith.constant 0 : i32
    %5 = arith.cmpi eq, %arg1, %c0_i32_2 : i32
    %6 = arith.extui %5 : i1 to i32
    %c0_i32_3 = arith.constant 0 : i32
    %7 = arith.cmpi ne, %6, %c0_i32_3 : i32
    scf.if %7 {
      %cst_16 = arith.constant 0.000000e+00 : f32
      %22 = vector.broadcast %cst_16 : f32 to vector<128x128xf32>
      %c0_17 = arith.constant 0 : index
      %c0_18 = arith.constant 0 : index
      %23 = vector.load %arg12[%c0_17, %c0_18] : memref<128x128xf32, #tpu.memory_space<vmem>>, vector<128x128xf32>
      tpu.vector_store %arg12[%c0_17, %c0_18], %22 {strides = array<i32>} : memref<128x128xf32, #tpu.memory_space<vmem>>, vector<128x128xf32>,
    } else {
    }
    %c0 = arith.constant 0 : index
    %c0_4 = arith.constant 0 : index
    %8 = vector.load %arg12[%c0, %c0_4] : memref<128x128xf32, #tpu.memory_space<vmem>>, vector<128x128xf32>
    %c0_5 = arith.constant 0 : index
    %c0_6 = arith.constant 0 : index
    %9 = vector.load %arg2[%c0_5, %c0_6] : memref<128x128xbf16, #tpu.memory_space<vmem>>, vector<128x128xbf16>
    %c0_7 = arith.constant 0 : index
    %c0_8 = arith.constant 0 : index
    %10 = vector.load %arg3[%c0_7, %c0_8] : memref<128x128xbf16, #tpu.memory_space<vmem>>, vector<128x128xbf16>
    %cst = arith.constant dense<0.000000e+00> : vector<128x128xf32>
    %11 = tpu.matmul %9, %10, %cst {dimension_numbers = #tpu.dot_dimension_numbers<[1], [0], [0], [1], [0, 0, 1, 1], [], []>} : vector<128x128xbf16>, vector<128x128xbf16>, vector<128x128xf32> -> vector<128x128xf32>
    %12 = arith.addf %8, %11 : vector<128x128xf32>
    %c0_9 = arith.constant 0 : index
    %c0_10 = arith.constant 0 : index
    %13 = vector.load %arg12[%c0_9, %c0_10] : memref<128x128xf32, #tpu.memory_space<vmem>>, vector<128x128xf32>
    tpu.vector_store %arg12[%c0_9, %c0_10], %12 {strides = array<i32>} : memref<128x128xf32, #tpu.memory_space<vmem>>, vector<128x128xf32>,
    %c0_i32_11 = arith.constant 0 : i32
    %14 = arith.cmpi eq, %arg1, %c0_i32_11 : i32
    %15 = arith.extui %14 : i1 to i32
    %c0_i32_12 = arith.constant 0 : i32
    %16 = arith.cmpi ne, %15, %c0_i32_12 : i32
    scf.if %16 {
      %c0_16 = arith.constant 0 : index
      %c0_17 = arith.constant 0 : index
      %22 = vector.load %arg12[%c0_16, %c0_17] : memref<128x128xf32, #tpu.memory_space<vmem>>, vector<128x128xf32>
      %23 = arith.truncf %22 : vector<128x128xf32> to vector<128x128xbf16>
      %c0_18 = arith.constant 0 : index
      %c0_19 = arith.constant 0 : index
      %24 = vector.load %arg4[%c0_18, %c0_19] : memref<128x128xbf16, #tpu.memory_space<vmem>>, vector<128x128xbf16>
      %cst_20 = arith.constant dense<0.000000e+00> : vector<128x128xf32>
      %25 = tpu.matmul %23, %24, %cst_20 {dimension_numbers = #tpu.dot_dimension_numbers<[1], [0], [0], [1], [0, 0, 1, 1], [], []>} : vector<128x128xbf16>, vector<128x128xbf16>, vector<128x128xf32> -> vector<128x128xf32>
      %c0_21 = arith.constant 0 : index
      %c0_22 = arith.constant 0 : index
      %26 = vector.load %arg5[%c0_21, %c0_22] : memref<1x128xf32, #tpu.memory_space<vmem>>, vector<1x128xf32>
      %27 = vector.broadcast %26 : vector<1x128xf32> to vector<128x128xf32>
      %28 = arith.addf %25, %27 : vector<128x128xf32>
      %cst_23 = arith.constant 0.000000e+00 : f32
      %29 = vector.broadcast %cst_23 : f32 to vector<128x128xf32>
      %30 = arith.maximumf %28, %29 : vector<128x128xf32>
      %c0_24 = arith.constant 0 : index
      %c0_25 = arith.constant 0 : index
      %31 = vector.load %arg13[%c0_24, %c0_25] : memref<8x128xf32, #tpu.memory_space<vmem>>, vector<8x128xf32>
      %c0_26 = arith.constant 0 : index
      %c0_27 = arith.constant 0 : index
      %32 = vector.load %arg6[%c0_26, %c0_27] : memref<8x128xbf16, #tpu.memory_space<vmem>>, vector<8x128xbf16>
      %33 = arith.truncf %30 : vector<128x128xf32> to vector<128x128xbf16>
      %cst_28 = arith.constant dense<0.000000e+00> : vector<8x128xf32>
      %34 = tpu.matmul %32, %33, %cst_28 {dimension_numbers = #tpu.dot_dimension_numbers<[1], [0], [0], [1], [0, 0, 1, 1], [], []>} : vector<8x128xbf16>, vector<128x128xbf16>, vector<8x128xf32> -> vector<8x128xf32>
      %35 = arith.addf %31, %34 : vector<8x128xf32>
      %c0_29 = arith.constant 0 : index
      %c0_30 = arith.constant 0 : index
      %36 = vector.load %arg13[%c0_29, %c0_30] : memref<8x128xf32, #tpu.memory_space<vmem>>, vector<8x128xf32>
      tpu.vector_store %arg13[%c0_29, %c0_30], %35 {strides = array<i32>} : memref<8x128xf32, #tpu.memory_space<vmem>>, vector<8x128xf32>,
    } else {
    }
    %c0_i32_13 = arith.constant 0 : i32
    %17 = arith.cmpi eq, %arg0, %c0_i32_13 : i32
    %c0_i32_14 = arith.constant 0 : i32
    %18 = arith.cmpi eq, %arg1, %c0_i32_14 : i32
    %19 = arith.andi %17, %18 : i1
    %20 = arith.extui %19 : i1 to i32
    %c0_i32_15 = arith.constant 0 : i32
    %21 = arith.cmpi ne, %20, %c0_i32_15 : i32
    scf.if %21 {
      %c0_16 = arith.constant 0 : index
      %c0_17 = arith.constant 0 : index
      %22 = vector.load %arg13[%c0_16, %c0_17] : memref<8x128xf32, #tpu.memory_space<vmem>>, vector<8x128xf32>
      %23 = arith.truncf %22 : vector<8x128xf32> to vector<8x128xbf16>
      %c0_18 = arith.constant 0 : index
      %c0_19 = arith.constant 0 : index
      %24 = vector.load %arg7[%c0_18, %c0_19] : memref<128x128xbf16, #tpu.memory_space<vmem>>, vector<128x128xbf16>
      %cst_20 = arith.constant dense<0.000000e+00> : vector<8x128xf32>
      %25 = tpu.matmul %23, %24, %cst_20 {dimension_numbers = #tpu.dot_dimension_numbers<[1], [0], [0], [1], [0, 0, 1, 1], [], []>} : vector<8x128xbf16>, vector<128x128xbf16>, vector<8x128xf32> -> vector<8x128xf32>
      %c0_21 = arith.constant 0 : index
      %c0_22 = arith.constant 0 : index
      %26 = vector.load %arg8[%c0_21, %c0_22] : memref<1x128xf32, #tpu.memory_space<vmem>>, vector<1x128xf32>
      %27 = vector.broadcast %26 : vector<1x128xf32> to vector<8x128xf32>
      %28 = arith.addf %25, %27 : vector<8x128xf32>
      %cst_23 = arith.constant 0.000000e+00 : f32
      %29 = vector.broadcast %cst_23 : f32 to vector<8x128xf32>
      %30 = arith.maximumf %28, %29 : vector<8x128xf32>
      %31 = arith.truncf %30 : vector<8x128xf32> to vector<8x128xbf16>
      %c0_24 = arith.constant 0 : index
      %c0_25 = arith.constant 0 : index
      %32 = vector.load %arg9[%c0_24, %c0_25] : memref<128x128xbf16, #tpu.memory_space<vmem>>, vector<128x128xbf16>
      %cst_26 = arith.constant dense<0.000000e+00> : vector<8x128xf32>
      %33 = tpu.matmul %31, %32, %cst_26 {dimension_numbers = #tpu.dot_dimension_numbers<[1], [0], [0], [1], [0, 0, 1, 1], [], []>} : vector<8x128xbf16>, vector<128x128xbf16>, vector<8x128xf32> -> vector<8x128xf32>
      %c0_27 = arith.constant 0 : index
      %c0_28 = arith.constant 0 : index
      %34 = vector.load %arg10[%c0_27, %c0_28] : memref<1x128xf32, #tpu.memory_space<vmem>>, vector<1x128xf32>
      %35 = vector.broadcast %34 : vector<1x128xf32> to vector<8x128xf32>
      %36 = arith.addf %33, %35 : vector<8x128xf32>
      %37 = tpu.iota {dimensions = array<i32: 1>} : vector<8x128xi32>
      %c4_i32 = arith.constant 4 : i32
      %38 = vector.broadcast %c4_i32 : i32 to vector<8x128xi32>
      %39 = arith.cmpi slt, %37, %38 : vector<8x128xi32>
      %cst_29 = arith.constant -1.000000e+30 : f32
      %40 = vector.broadcast %cst_29 : f32 to vector<8x128xf32>
      %41 = arith.select %39, %36, %40 : vector<8x128xi1>, vector<8x128xf32>
      %cst_30 = arith.constant dense<0xFF800000> : vector<8xf32>
      %42 = vector.multi_reduction <maximumf>, %41, %cst_30 [1] : vector<8x128xf32> to vector<8xf32>
      %43 = vector.shape_cast %42 : vector<8xf32> to vector<8x1xf32>
      %44 = vector.broadcast %43 : vector<8x1xf32> to vector<8x128xf32>
      %45 = arith.subf %41, %44 : vector<8x128xf32>
      %46 = math.exp %45 : vector<8x128xf32>
      %cst_31 = arith.constant 0.000000e+00 : f32
      %47 = vector.broadcast %cst_31 : f32 to vector<8x128xf32>
      %48 = arith.select %39, %46, %47 : vector<8x128xi1>, vector<8x128xf32>
      %cst_32 = arith.constant dense<0.000000e+00> : vector<8xf32>
      %49 = vector.multi_reduction <add>, %48, %cst_32 [1] : vector<8x128xf32> to vector<8xf32>
      %50 = vector.shape_cast %49 : vector<8xf32> to vector<8x1xf32>
      %51 = math.log %50 : vector<8x1xf32>
      %52 = vector.broadcast %51 : vector<8x1xf32> to vector<8x128xf32>
      %53 = arith.subf %45, %52 : vector<8x128xf32>
      %c0_33 = arith.constant 0 : index
      %c0_34 = arith.constant 0 : index
      %54 = vector.load %arg11[%c0_33, %c0_34] : memref<8x128xf32, #tpu.memory_space<vmem>>, vector<8x128xf32>
      tpu.vector_store %arg11[%c0_33, %c0_34], %53 {strides = array<i32>} : memref<8x128xf32, #tpu.memory_space<vmem>>, vector<8x128xf32>,
    } else {
    }
    return
  }
  func.func @transform_0(%arg0: i32, %arg1: i32) -> (i32, i32) {
    %c0_i32 = arith.constant 0 : i32
    return %arg0, %arg1 : i32, i32
  }
  func.func @transform_1(%arg0: i32, %arg1: i32) -> (i32, i32) {
    %c0_i32 = arith.constant 0 : i32
    %c0_i32_0 = arith.constant 0 : i32
    return %arg1, %c0_i32 : i32, i32
  }
  func.func @transform_2(%arg0: i32, %arg1: i32) -> (i32, i32) {
    %c0_i32 = arith.constant 0 : i32
    %c0_i32_0 = arith.constant 0 : i32
    %c0_i32_1 = arith.constant 0 : i32
    return %c0_i32, %c0_i32_0 : i32, i32
  }
  func.func @transform_3(%arg0: i32, %arg1: i32) -> (i32, i32) {
    %c0_i32 = arith.constant 0 : i32
    %c0_i32_0 = arith.constant 0 : i32
    %c0_i32_1 = arith.constant 0 : i32
    return %c0_i32, %c0_i32_0 : i32, i32
  }
  func.func @transform_4(%arg0: i32, %arg1: i32) -> (i32, i32) {
    %c0_i32 = arith.constant 0 : i32
    %c0_i32_0 = arith.constant 0 : i32
    return %c0_i32, %arg0 : i32, i32
  }
  func.func @transform_5(%arg0: i32, %arg1: i32) -> (i32, i32) {
    %c0_i32 = arith.constant 0 : i32
    %c0_i32_0 = arith.constant 0 : i32
    %c0_i32_1 = arith.constant 0 : i32
    return %c0_i32, %c0_i32_0 : i32, i32
  }
  func.func @transform_6(%arg0: i32, %arg1: i32) -> (i32, i32) {
    %c0_i32 = arith.constant 0 : i32
    %c0_i32_0 = arith.constant 0 : i32
    %c0_i32_1 = arith.constant 0 : i32
    return %c0_i32, %c0_i32_0 : i32, i32
  }
  func.func @transform_7(%arg0: i32, %arg1: i32) -> (i32, i32) {
    %c0_i32 = arith.constant 0 : i32
    %c0_i32_0 = arith.constant 0 : i32
    %c0_i32_1 = arith.constant 0 : i32
    return %c0_i32, %c0_i32_0 : i32, i32
  }
  func.func @transform_8(%arg0: i32, %arg1: i32) -> (i32, i32) {
    %c0_i32 = arith.constant 0 : i32
    %c0_i32_0 = arith.constant 0 : i32
    %c0_i32_1 = arith.constant 0 : i32
    return %c0_i32, %c0_i32_0 : i32, i32
  }
  func.func @transform_9(%arg0: i32, %arg1: i32) -> (i32, i32) {
    %c0_i32 = arith.constant 0 : i32
    %c0_i32_0 = arith.constant 0 : i32
    %c0_i32_1 = arith.constant 0 : i32
    return %c0_i32, %c0_i32_0 : i32, i32
  }
}

module attributes {stable_mosaic.version = 11 : i64} {
  func.func @_gcn_layer_kernel(%arg0: i32, %arg1: i32, %arg2: memref<128x128xbf16, #tpu.memory_space<vmem>>, %arg3: memref<128x128xbf16, #tpu.memory_space<vmem>>, %arg4: memref<128x128xbf16, #tpu.memory_space<vmem>>, %arg5: memref<1x128xf32, #tpu.memory_space<vmem>>, %arg6: memref<128x128xbf16, #tpu.memory_space<vmem>>, %arg7: memref<128x128xf32, #tpu.memory_space<vmem>>) attributes {dimension_semantics = [#tpu.dimension_semantics<parallel>, #tpu.dimension_semantics<arbitrary>], iteration_bounds = array<i64: 1, 1>, scalar_prefetch = 0 : i64, scratch_operands = 1 : i64, tpu.core_type = #tpu.core_type<tc>, window_params = [{transform_indices = @transform_0, window_bounds = array<i64: 128, 128>}, {transform_indices = @transform_1, window_bounds = array<i64: 128, 128>}, {pipeline_mode = #tpu.pipeline_mode<synchronous>, transform_indices = @transform_2, window_bounds = array<i64: 128, 128>}, {pipeline_mode = #tpu.pipeline_mode<synchronous>, transform_indices = @transform_3, window_bounds = array<i64: 1, 128>}, {transform_indices = @transform_4, window_bounds = array<i64: 128, 128>}]} {
    %c0_i32 = arith.constant 0 : i32
    %0 = arith.cmpi eq, %arg1, %c0_i32 : i32
    %1 = arith.extui %0 : i1 to i32
    %c0_i32_0 = arith.constant 0 : i32
    %2 = arith.cmpi ne, %1, %c0_i32_0 : i32
    scf.if %2 {
      %cst_10 = arith.constant 0.000000e+00 : f32
      %12 = vector.broadcast %cst_10 : f32 to vector<128x128xf32>
      %c0_11 = arith.constant 0 : index
      %c0_12 = arith.constant 0 : index
      %13 = vector.load %arg7[%c0_11, %c0_12] : memref<128x128xf32, #tpu.memory_space<vmem>>, vector<128x128xf32>
      tpu.vector_store %arg7[%c0_11, %c0_12], %12 {strides = array<i32>} : memref<128x128xf32, #tpu.memory_space<vmem>>, vector<128x128xf32>,
    } else {
    }
    %c0 = arith.constant 0 : index
    %c0_1 = arith.constant 0 : index
    %3 = vector.load %arg7[%c0, %c0_1] : memref<128x128xf32, #tpu.memory_space<vmem>>, vector<128x128xf32>
    %c0_2 = arith.constant 0 : index
    %c0_3 = arith.constant 0 : index
    %4 = vector.load %arg2[%c0_2, %c0_3] : memref<128x128xbf16, #tpu.memory_space<vmem>>, vector<128x128xbf16>
    %c0_4 = arith.constant 0 : index
    %c0_5 = arith.constant 0 : index
    %5 = vector.load %arg3[%c0_4, %c0_5] : memref<128x128xbf16, #tpu.memory_space<vmem>>, vector<128x128xbf16>
    %cst = arith.constant dense<0.000000e+00> : vector<128x128xf32>
    %6 = tpu.matmul %4, %5, %cst {dimension_numbers = #tpu.dot_dimension_numbers<[1], [0], [0], [1], [0, 0, 1, 1], [], []>} : vector<128x128xbf16>, vector<128x128xbf16>, vector<128x128xf32> -> vector<128x128xf32>
    %7 = arith.addf %3, %6 : vector<128x128xf32>
    %c0_6 = arith.constant 0 : index
    %c0_7 = arith.constant 0 : index
    %8 = vector.load %arg7[%c0_6, %c0_7] : memref<128x128xf32, #tpu.memory_space<vmem>>, vector<128x128xf32>
    tpu.vector_store %arg7[%c0_6, %c0_7], %7 {strides = array<i32>} : memref<128x128xf32, #tpu.memory_space<vmem>>, vector<128x128xf32>,
    %c0_i32_8 = arith.constant 0 : i32
    %9 = arith.cmpi eq, %arg1, %c0_i32_8 : i32
    %10 = arith.extui %9 : i1 to i32
    %c0_i32_9 = arith.constant 0 : i32
    %11 = arith.cmpi ne, %10, %c0_i32_9 : i32
    scf.if %11 {
      %c0_10 = arith.constant 0 : index
      %c0_11 = arith.constant 0 : index
      %12 = vector.load %arg7[%c0_10, %c0_11] : memref<128x128xf32, #tpu.memory_space<vmem>>, vector<128x128xf32>
      %13 = arith.truncf %12 : vector<128x128xf32> to vector<128x128xbf16>
      %c0_12 = arith.constant 0 : index
      %c0_13 = arith.constant 0 : index
      %14 = vector.load %arg4[%c0_12, %c0_13] : memref<128x128xbf16, #tpu.memory_space<vmem>>, vector<128x128xbf16>
      %cst_14 = arith.constant dense<0.000000e+00> : vector<128x128xf32>
      %15 = tpu.matmul %13, %14, %cst_14 {dimension_numbers = #tpu.dot_dimension_numbers<[1], [0], [0], [1], [0, 0, 1, 1], [], []>} : vector<128x128xbf16>, vector<128x128xbf16>, vector<128x128xf32> -> vector<128x128xf32>
      %c0_15 = arith.constant 0 : index
      %c0_16 = arith.constant 0 : index
      %16 = vector.load %arg5[%c0_15, %c0_16] : memref<1x128xf32, #tpu.memory_space<vmem>>, vector<1x128xf32>
      %17 = vector.broadcast %16 : vector<1x128xf32> to vector<128x128xf32>
      %18 = arith.addf %15, %17 : vector<128x128xf32>
      %cst_17 = arith.constant 0.000000e+00 : f32
      %19 = vector.broadcast %cst_17 : f32 to vector<128x128xf32>
      %20 = arith.maximumf %18, %19 : vector<128x128xf32>
      %21 = arith.truncf %20 : vector<128x128xf32> to vector<128x128xbf16>
      %c0_18 = arith.constant 0 : index
      %c0_19 = arith.constant 0 : index
      %22 = vector.load %arg6[%c0_18, %c0_19] : memref<128x128xbf16, #tpu.memory_space<vmem>>, vector<128x128xbf16>
      tpu.vector_store %arg6[%c0_18, %c0_19], %21 {strides = array<i32>} : memref<128x128xbf16, #tpu.memory_space<vmem>>, vector<128x128xbf16>,
    } else {
    }
    return
  }
  func.func @transform_0(%arg0: i32, %arg1: i32) -> (i32, i32) {
    %c0_i32 = arith.constant 0 : i32
    return %arg0, %arg1 : i32, i32
  }
  func.func @transform_1(%arg0: i32, %arg1: i32) -> (i32, i32) {
    %c0_i32 = arith.constant 0 : i32
    %c0_i32_0 = arith.constant 0 : i32
    return %arg1, %c0_i32 : i32, i32
  }
  func.func @transform_2(%arg0: i32, %arg1: i32) -> (i32, i32) {
    %c0_i32 = arith.constant 0 : i32
    %c0_i32_0 = arith.constant 0 : i32
    %c0_i32_1 = arith.constant 0 : i32
    return %c0_i32, %c0_i32_0 : i32, i32
  }
  func.func @transform_3(%arg0: i32, %arg1: i32) -> (i32, i32) {
    %c0_i32 = arith.constant 0 : i32
    %c0_i32_0 = arith.constant 0 : i32
    %c0_i32_1 = arith.constant 0 : i32
    return %c0_i32, %c0_i32_0 : i32, i32
  }
  func.func @transform_4(%arg0: i32, %arg1: i32) -> (i32, i32) {
    %c0_i32 = arith.constant 0 : i32
    %c0_i32_0 = arith.constant 0 : i32
    return %arg0, %c0_i32 : i32, i32
  }
}

module attributes {stable_mosaic.version = 11 : i64} {
  func.func @_gcn_layer_kernel(%arg0: i32, %arg1: i32, %arg2: memref<128x128xbf16, #tpu.memory_space<vmem>>, %arg3: memref<128x128xbf16, #tpu.memory_space<vmem>>, %arg4: memref<128x128xbf16, #tpu.memory_space<vmem>>, %arg5: memref<1x128xf32, #tpu.memory_space<vmem>>, %arg6: memref<128x128xbf16, #tpu.memory_space<vmem>>, %arg7: memref<128x128xf32, #tpu.memory_space<vmem>>) attributes {dimension_semantics = [#tpu.dimension_semantics<parallel>, #tpu.dimension_semantics<arbitrary>], iteration_bounds = array<i64: 1, 1>, scalar_prefetch = 0 : i64, scratch_operands = 1 : i64, tpu.core_type = #tpu.core_type<tc>, window_params = [{transform_indices = @transform_0, window_bounds = array<i64: 128, 128>}, {transform_indices = @transform_1, window_bounds = array<i64: 128, 128>}, {pipeline_mode = #tpu.pipeline_mode<synchronous>, transform_indices = @transform_2, window_bounds = array<i64: 128, 128>}, {pipeline_mode = #tpu.pipeline_mode<synchronous>, transform_indices = @transform_3, window_bounds = array<i64: 1, 128>}, {transform_indices = @transform_4, window_bounds = array<i64: 128, 128>}]} {
    %c0_i32 = arith.constant 0 : i32
    %0 = arith.cmpi eq, %arg1, %c0_i32 : i32
    %1 = arith.extui %0 : i1 to i32
    %c0_i32_0 = arith.constant 0 : i32
    %2 = arith.cmpi ne, %1, %c0_i32_0 : i32
    scf.if %2 {
      %cst_10 = arith.constant 0.000000e+00 : f32
      %12 = vector.broadcast %cst_10 : f32 to vector<128x128xf32>
      %c0_11 = arith.constant 0 : index
      %c0_12 = arith.constant 0 : index
      %13 = vector.load %arg7[%c0_11, %c0_12] : memref<128x128xf32, #tpu.memory_space<vmem>>, vector<128x128xf32>
      tpu.vector_store %arg7[%c0_11, %c0_12], %12 {strides = array<i32>} : memref<128x128xf32, #tpu.memory_space<vmem>>, vector<128x128xf32>,
    } else {
    }
    %c0 = arith.constant 0 : index
    %c0_1 = arith.constant 0 : index
    %3 = vector.load %arg7[%c0, %c0_1] : memref<128x128xf32, #tpu.memory_space<vmem>>, vector<128x128xf32>
    %c0_2 = arith.constant 0 : index
    %c0_3 = arith.constant 0 : index
    %4 = vector.load %arg2[%c0_2, %c0_3] : memref<128x128xbf16, #tpu.memory_space<vmem>>, vector<128x128xbf16>
    %c0_4 = arith.constant 0 : index
    %c0_5 = arith.constant 0 : index
    %5 = vector.load %arg3[%c0_4, %c0_5] : memref<128x128xbf16, #tpu.memory_space<vmem>>, vector<128x128xbf16>
    %cst = arith.constant dense<0.000000e+00> : vector<128x128xf32>
    %6 = tpu.matmul %4, %5, %cst {dimension_numbers = #tpu.dot_dimension_numbers<[1], [0], [0], [1], [0, 0, 1, 1], [], []>} : vector<128x128xbf16>, vector<128x128xbf16>, vector<128x128xf32> -> vector<128x128xf32>
    %7 = arith.addf %3, %6 : vector<128x128xf32>
    %c0_6 = arith.constant 0 : index
    %c0_7 = arith.constant 0 : index
    %8 = vector.load %arg7[%c0_6, %c0_7] : memref<128x128xf32, #tpu.memory_space<vmem>>, vector<128x128xf32>
    tpu.vector_store %arg7[%c0_6, %c0_7], %7 {strides = array<i32>} : memref<128x128xf32, #tpu.memory_space<vmem>>, vector<128x128xf32>,
    %c0_i32_8 = arith.constant 0 : i32
    %9 = arith.cmpi eq, %arg1, %c0_i32_8 : i32
    %10 = arith.extui %9 : i1 to i32
    %c0_i32_9 = arith.constant 0 : i32
    %11 = arith.cmpi ne, %10, %c0_i32_9 : i32
    scf.if %11 {
      %c0_10 = arith.constant 0 : index
      %c0_11 = arith.constant 0 : index
      %12 = vector.load %arg7[%c0_10, %c0_11] : memref<128x128xf32, #tpu.memory_space<vmem>>, vector<128x128xf32>
      %13 = arith.truncf %12 : vector<128x128xf32> to vector<128x128xbf16>
      %c0_12 = arith.constant 0 : index
      %c0_13 = arith.constant 0 : index
      %14 = vector.load %arg4[%c0_12, %c0_13] : memref<128x128xbf16, #tpu.memory_space<vmem>>, vector<128x128xbf16>
      %cst_14 = arith.constant dense<0.000000e+00> : vector<128x128xf32>
      %15 = tpu.matmul %13, %14, %cst_14 {dimension_numbers = #tpu.dot_dimension_numbers<[1], [0], [0], [1], [0, 0, 1, 1], [], []>} : vector<128x128xbf16>, vector<128x128xbf16>, vector<128x128xf32> -> vector<128x128xf32>
      %c0_15 = arith.constant 0 : index
      %c0_16 = arith.constant 0 : index
      %16 = vector.load %arg5[%c0_15, %c0_16] : memref<1x128xf32, #tpu.memory_space<vmem>>, vector<1x128xf32>
      %17 = vector.broadcast %16 : vector<1x128xf32> to vector<128x128xf32>
      %18 = arith.addf %15, %17 : vector<128x128xf32>
      %cst_17 = arith.constant 0.000000e+00 : f32
      %19 = vector.broadcast %cst_17 : f32 to vector<128x128xf32>
      %20 = arith.maximumf %18, %19 : vector<128x128xf32>
      %21 = arith.truncf %20 : vector<128x128xf32> to vector<128x128xbf16>
      %c0_18 = arith.constant 0 : index
      %c0_19 = arith.constant 0 : index
      %22 = vector.load %arg6[%c0_18, %c0_19] : memref<128x128xbf16, #tpu.memory_space<vmem>>, vector<128x128xbf16>
      tpu.vector_store %arg6[%c0_18, %c0_19], %21 {strides = array<i32>} : memref<128x128xbf16, #tpu.memory_space<vmem>>, vector<128x128xbf16>,
    } else {
    }
    return
  }
  func.func @transform_0(%arg0: i32, %arg1: i32) -> (i32, i32) {
    %c0_i32 = arith.constant 0 : i32
    return %arg0, %arg1 : i32, i32
  }
  func.func @transform_1(%arg0: i32, %arg1: i32) -> (i32, i32) {
    %c0_i32 = arith.constant 0 : i32
    %c0_i32_0 = arith.constant 0 : i32
    return %arg1, %c0_i32 : i32, i32
  }
  func.func @transform_2(%arg0: i32, %arg1: i32) -> (i32, i32) {
    %c0_i32 = arith.constant 0 : i32
    %c0_i32_0 = arith.constant 0 : i32
    %c0_i32_1 = arith.constant 0 : i32
    return %c0_i32, %c0_i32_0 : i32, i32
  }
  func.func @transform_3(%arg0: i32, %arg1: i32) -> (i32, i32) {
    %c0_i32 = arith.constant 0 : i32
    %c0_i32_0 = arith.constant 0 : i32
    %c0_i32_1 = arith.constant 0 : i32
    return %c0_i32, %c0_i32_0 : i32, i32
  }
  func.func @transform_4(%arg0: i32, %arg1: i32) -> (i32, i32) {
    %c0_i32 = arith.constant 0 : i32
    %c0_i32_0 = arith.constant 0 : i32
    return %arg0, %c0_i32 : i32, i32
  }
}

</mosaic_0001>

<bundles_post_ra>
// kernel: gcn_forward.3
= control target key start
LH: loop header
LB: loop body
LE: loop exit
PB: predicated region body
PF: predicated region fallthrough
CT: control target
= control target key end

     0   :  { %9 = vsyncpa [#allocation4], 0  ;;  %s1105_s0 = inlined_call_operand.hbm [shape: bf16[128,128], index: 0, kind: input, shape index: {}]   ;;  %s1106_s1 = inlined_call_operand.hbm [shape: bf16[128,128], index: 1, kind: input, shape index: {}]   ;;  %s1107_s2 = inlined_call_operand.hbm [shape: bf16[128,128], index: 2, kind: input, shape index: {}]   ;;  %s1108_s3 = inlined_call_operand.hbm [shape: f32[1,128], index: 3, kind: input, shape index: {}]   ;;  %s1109_s4 = inlined_call_operand.vmem [shape: bf16[128,128], index: 4, kind: output, shape index: {}]  }
   0x1   :  { %10 = vsyncpa [#allocation6], 0 }
   0x2   :  { %11 = vsyncpa [#allocation9], 0  ;;  %s986_s15 = smov [#allocation5]   ;;  %s987_s17 = smov [#allocation3]  }
   0x3   :  { %s29_s16 = sshll.u32 %s986_s15, 4  ;;  %s17_s18 = sshll.u32 %s987_s17, 4  ;;  %s30_s16 = int_to_ptr.vmem [resolvable:$true] %s29_s16  ;;  %s1017_s18 = int_to_ptr.vmem [resolvable:$true] %s17_s18 }
   0x4   :  { %s892_s21 = scalar_lea.hbm %s1106_s1, 1024 }
   0x5   :  { %p893_p0 = scmp.ne.s32.totalorder %s1106_s1, %s892_s21  ;;  %p896_p1 = scmp.lt.u32.totalorder %s892_s21, %s1106_s1 }
   0x7   :  { %p898_p2 = pnand %p896_p1, %p893_p0 }
   0x9   :  { %901 = shalt.err (!%p898_p2)
}
   0xa   :  { %s902_s26 = scalar_lea.vmem %s30_s16, 1024  ;;  %p907_p4 = scmp.lt.s32.totalorder %s30_s16, %s30_s16 }
   0xb   :  { %p903_p3 = scmp.ne.s32.totalorder %s30_s16, %s902_s26  ;;  %p908_p5 = scmp.lt.s32.totalorder %s902_s26, %s902_s26 }
   0xd   :  { %p909_p6 = por %p908_p5, %p907_p4 }
   0xf   :  { %p910_p7 = pnand %p909_p6, %p903_p3 }
  0x11   :  { %913 = shalt.err (!%p910_p7)
}
  0x12   :  { %s988_s27 = smov 64   ;;  %s989_s28 = smov 4  }
  0x13   :  { %35 = dma.hbm_to_vmem [thread:$0]  %s1106_s1, 1024, %s30_s16, [#allocation6], %s988_s27, %s988_s27, %s989_s28  }
  0x14   :  { %s914_s7 = scalar_lea.hbm %s1105_s0, 1024 }
  0x15   :  { %p915_p8 = scmp.ne.s32.totalorder %s1105_s0, %s914_s7  ;;  %p918_p9 = scmp.lt.u32.totalorder %s914_s7, %s1105_s0 }
  0x17   :  { %p920_p10 = pnand %p918_p9, %p915_p8 }
  0x19   :  { %923 = shalt.err (!%p920_p10)
}
  0x1a   :  { %s924_s12 = scalar_lea.vmem %s1017_s18, 1024  ;;  %p929_p12 = scmp.lt.s32.totalorder %s1017_s18, %s1017_s18 }
  0x1b   :  { %p925_p11 = scmp.ne.s32.totalorder %s1017_s18, %s924_s12  ;;  %p930_p13 = scmp.lt.s32.totalorder %s924_s12, %s924_s12 }
  0x1d   :  { %p931_p0 = por %p930_p13, %p929_p12 }
  0x1f   :  { %p932_p1 = pnand %p931_p0, %p925_p11 }
  0x21   :  { %935 = shalt.err (!%p932_p1)
}
  0x22   :  { %23 = dma.hbm_to_vmem [thread:$0]  %s1105_s0, 1024, %s1017_s18, [#allocation4], %s988_s27, %s988_s27, %s989_s28  }
  0x23   :  { %s990_s14 = smov [#allocation7]   ;;  %s991_s16 = smov [#allocation8]  }
  0x24   :  { %s41_s15 = sshll.u32 %s990_s14, 4  ;;  %s54_s17 = sshll.u32 %s991_s16, 4  ;;  %s42_s15 = int_to_ptr.vmem [resolvable:$true] %s41_s15  ;;  %s55_s17 = int_to_ptr.vmem [resolvable:$true] %s54_s17 }
  0x25   :  { %s936_s21 = scalar_lea.hbm %s1107_s2, 1024 }
  0x26   :  { %p937_p2 = scmp.ne.s32.totalorder %s1107_s2, %s936_s21  ;;  %p940_p3 = scmp.lt.u32.totalorder %s936_s21, %s1107_s2 }
  0x28   :  { %p942_p4 = pnand %p940_p3, %p937_p2 }
  0x2a   :  { %945 = shalt.err (!%p942_p4)
}
  0x2b   :  { %s946_s0 = scalar_lea.vmem %s42_s15, 1024  ;;  %p951_p6 = scmp.lt.s32.totalorder %s42_s15, %s42_s15 }
  0x2c   :  { %p947_p5 = scmp.ne.s32.totalorder %s42_s15, %s946_s0  ;;  %p952_p7 = scmp.lt.s32.totalorder %s946_s0, %s946_s0 }
  0x2e   :  { %p953_p8 = por %p952_p7, %p951_p6 }
  0x30   :  { %p954_p9 = pnand %p953_p8, %p947_p5 }
  0x32   :  { %957 = shalt.err (!%p954_p9)
}
  0x33   :  { %47 = dma.hbm_to_vmem [thread:$0]  %s1107_s2, 1024, %s42_s15, [#allocation6], %s988_s27, %s988_s27, %s989_s28  }
  0x34   :  { %s958_s5 = scalar_lea.hbm %s1108_s3, 16 }
  0x35   :  { %p959_p10 = scmp.ne.s32.totalorder %s1108_s3, %s958_s5  ;;  %p962_p11 = scmp.lt.u32.totalorder %s958_s5, %s1108_s3 }
  0x37   :  { %p964_p12 = pnand %p962_p11, %p959_p10 }
  0x39   :  { %967 = shalt.err (!%p964_p12)
}
  0x3a   :  { %s968_s10 = scalar_lea.vmem %s55_s17, 16  ;;  %s972_s11 = scalar_lea.vmem %s55_s17, 32 }
  0x3b   :  { %p969_p13 = scmp.ne.s32.totalorder %s55_s17, %s968_s10  ;;  %p973_p0 = scmp.lt.s32.totalorder %s55_s17, %s55_s17 }
  0x3c   :  { %p974_p1 = scmp.lt.s32.totalorder %s972_s11, %s968_s10 }
  0x3e   :  { %p975_p2 = por %p974_p1, %p973_p0 }
  0x40   :  { %p976_p3 = pnand %p975_p2, %p969_p13 }
  0x42   :  { %979 = shalt.err (!%p976_p3)
}
  0x43   :  { %57 = dma.hbm_to_vmem [thread:$0]  %s1108_s3, 16, %s55_s17, [#allocation9]  }
  0x44   :  { %980 = dma.done.wait [#allocation4], 1024  }
  0x45   :  { %981 = vsyncadd [#allocation4], 4294966272 }
  0x46   :  { %982 = dma.done.wait [#allocation6], 2048  }
  0x47   :  { %983 = vsyncadd [#allocation6], 4294965248 }
  0x48   :  { %984 = dma.done.wait [#allocation9], 16  }
  0x49   :  { %985 = vsyncadd [#allocation9], 4294967280  ;;  %v868_v0 = vld [vmem:[#allocation5] sm:$0xff]   ;;  %v869_v1 = vld [vmem:[#allocation5 + $0x8] sm:$0xff]  }
  0x4a   :  { %798 = vmatprep.subr.bf16.mxu0 %v868_v0  ;;  %v870_v2 = vld [vmem:[#allocation5 + $0x10] sm:$0xff]   ;;  %v871_v3 = vld [vmem:[#allocation5 + $0x18] sm:$0xff]   ;;  %v876_v4 = vld [vmem:[#allocation3] sm:$0xff]  }
  0x4b   :  { %799 = vmatpush3.bf16.msra.mxu0 %v868_v0  ;;  %814 = vmatprep.mubr.bf16.mxu0 %v876_v4  ;;  %v872_v5 = vld [vmem:[#allocation5 + $0x20] sm:$0xff]   ;;  %v873_v6 = vld [vmem:[#allocation5 + $0x28] sm:$0xff]   ;;  %v874_v9 = vld [vmem:[#allocation5 + $0x30] sm:$0xff]  }
  0x4c   :  { %800 = vmatprep.subr.bf16.mxu0 %v869_v1  ;;  %v884_v7 = vld [vmem:[#allocation7] sm:$0xff]   ;;  %v885_v8 = vld [vmem:[#allocation7 + $0x8] sm:$0xff]   ;;  %v886_v10 = vld [vmem:[#allocation7 + $0x10] sm:$0xff]  }
  0x4d   :  { %830 = vmatprep.subr.bf16.mxu1 %v884_v7  ;;  %v875_v11 = vld [vmem:[#allocation5 + $0x38] sm:$0xff]   ;;  %v888_v13 = vld [vmem:[#allocation7 + $0x20] sm:$0xff]   ;;  %v877_v14 = vld [vmem:[#allocation3 + $0x8] sm:$0xff]  }
  0x4e   :  { %831 = vmatpush3.bf16.msra.mxu1 %v884_v7  ;;  %v887_v12 = vld [vmem:[#allocation7 + $0x18] sm:$0xff]   ;;  %v878_v15 = vld [vmem:[#allocation3 + $0x10] sm:$0xff]   ;;  %v889_v16 = vld [vmem:[#allocation7 + $0x28] sm:$0xff]  }
  0x4f   :  { %801 = vmatpush3.bf16.msra.mxu0 %v869_v1  ;;  %832 = vmatprep.subr.bf16.mxu1 %v885_v8  ;;  %v890_v17 = vld [vmem:[#allocation7 + $0x30] sm:$0xff]   ;;  %v879_v18 = vld [vmem:[#allocation3 + $0x18] sm:$0xff]   ;;  %v880_v19 = vld [vmem:[#allocation3 + $0x20] sm:$0xff]  }
  0x50   :  { %802 = vmatprep.subr.bf16.mxu0 %v870_v2  ;;  %v881_v20 = vld [vmem:[#allocation3 + $0x28] sm:$0xff]   ;;  %v882_v21 = vld [vmem:[#allocation3 + $0x30] sm:$0xff]   ;;  %v883_v22 = vld [vmem:[#allocation3 + $0x38] sm:$0xff]  }
  0x51   :  { %v891_v23 = vld [vmem:[#allocation7 + $0x38] sm:$0xff]   ;;  %v678_v48 = vld [vmem:[#allocation8] ss:$0 sm:$0xff] }
  0x52   :  { %833 = vmatpush3.bf16.msra.mxu1 %v885_v8 }
  0x53   :  { %803 = vmatpush3.bf16.msra.mxu0 %v870_v2  ;;  %834 = vmatprep.subr.bf16.mxu1 %v886_v10 }
  0x54   :  { %804 = vmatprep.subr.bf16.mxu0 %v871_v3 }
  0x56   :  { %835 = vmatpush3.bf16.msra.mxu1 %v886_v10 }
  0x57   :  { %805 = vmatpush3.bf16.msra.mxu0 %v871_v3  ;;  %836 = vmatprep.subr.bf16.mxu1 %v887_v12 }
  0x58   :  { %806 = vmatprep.subr.bf16.mxu0 %v872_v5 }
  0x5a   :  { %837 = vmatpush3.bf16.msra.mxu1 %v887_v12 }
  0x5b   :  { %807 = vmatpush3.bf16.msra.mxu0 %v872_v5  ;;  %838 = vmatprep.subr.bf16.mxu1 %v888_v13 }
  0x5c   :  { %808 = vmatprep.subr.bf16.mxu0 %v873_v6 }
  0x5e   :  { %839 = vmatpush3.bf16.msra.mxu1 %v888_v13 }
  0x5f   :  { %809 = vmatpush3.bf16.msra.mxu0 %v873_v6  ;;  %840 = vmatprep.subr.bf16.mxu1 %v889_v16 }
  0x60   :  { %810 = vmatprep.subr.bf16.mxu0 %v874_v9 }
  0x62   :  { %841 = vmatpush3.bf16.msra.mxu1 %v889_v16 }
  0x63   :  { %811 = vmatpush3.bf16.msra.mxu0 %v874_v9  ;;  %842 = vmatprep.subr.bf16.mxu1 %v890_v17 }
  0x64   :  { %812 = vmatprep.subr.bf16.mxu0 %v875_v11 }
  0x66   :  { %843 = vmatpush3.bf16.msra.mxu1 %v890_v17 }
  0x67   :  { %813 = vmatpush3.bf16.msra.mxu0 %v875_v11  ;;  %844 = vmatprep.subr.bf16.mxu1 %v891_v23 }
  0x6a   :  { %815 = vmatmul.mubr.bf16.vlgmr.msra.gmra.mrb[0].mxu0 %v877_v14  ;;  %845 = vmatpush3.bf16.msra.mxu1 %v891_v23 }
  0x6b   :  { %818 = vmatprep.mubr.bf16.mxu0 %v878_v15 }
  0x72   :  { %819 = vmatmul.mubr.bf16.gmra.mrb[4].mxu0 %v879_v18 }
  0x73   :  { %822 = vmatprep.mubr.bf16.mxu0 %v880_v19 }
  0x7a   :  { %823 = vmatmul.mubr.bf16.gmra.mrb[8].mxu0 %v881_v20 }
  0x7b   :  { %826 = vmatprep.mubr.bf16.mxu0 %v882_v21 }
  0x82   :  { %827 = vmatmul.mubr.bf16.gmra.mrb[12].mxu0 %v883_v22 }
 0x13d   :  { %v816_v24 = vpop.f32.mrb[0].mxu0 }
 0x13e   :  { %v269_v25 = vpop.f32.mrb[1].mxu0 }
 0x13f   :  { %v817_v26 = vpop.f32.mrb[2].mxu0 }
 0x140   :  { %v384_v27 = vpack.c.bf16 %v817_v26, %v816_v24  ;;  %v272_v28 = vpop.f32.mrb[3].mxu0 }
 0x141   :  { %v383_v29 = vpack.c.bf16 %v272_v28, %v269_v25 }
 0x143   :  { %846 = vmatprep.mubr.bf16.mxu1 %v383_v29 }
 0x144   :  { %847 = vmatmul.mubr.bf16.vlgmr.msra.gmra.mrb[0].mxu1 %v384_v27 }
 0x145   :  { %v820_v30 = vpop.f32.mrb[4].mxu0 }
 0x146   :  { %v285_v31 = vpop.f32.mrb[5].mxu0 }
 0x147   :  { %v821_v32 = vpop.f32.mrb[6].mxu0 }
 0x148   :  { %v386_v33 = vpack.c.bf16 %v821_v32, %v820_v30  ;;  %v288_v34 = vpop.f32.mrb[7].mxu0 }
 0x149   :  { %v385_v35 = vpack.c.bf16 %v288_v34, %v285_v31 }
 0x14b   :  { %850 = vmatprep.mubr.bf16.mxu1 %v385_v35 }
 0x14c   :  { %851 = vmatmul.mubr.bf16.gmra.mrb[4].mxu1 %v386_v33 }
 0x14d   :  { %v824_v36 = vpop.f32.mrb[8].mxu0 }
 0x14e   :  { %v301_v37 = vpop.f32.mrb[9].mxu0 }
 0x14f   :  { %v825_v38 = vpop.f32.mrb[10].mxu0 }
 0x150   :  { %v388_v39 = vpack.c.bf16 %v825_v38, %v824_v36  ;;  %v304_v40 = vpop.f32.mrb[11].mxu0 }
 0x151   :  { %v387_v41 = vpack.c.bf16 %v304_v40, %v301_v37 }
 0x153   :  { %854 = vmatprep.mubr.bf16.mxu1 %v387_v41 }
 0x154   :  { %855 = vmatmul.mubr.bf16.gmra.mrb[8].mxu1 %v388_v39 }
 0x155   :  { %v828_v42 = vpop.f32.mrb[12].mxu0 }
 0x156   :  { %v317_v43 = vpop.f32.mrb[13].mxu0 }
 0x157   :  { %v829_v44 = vpop.f32.mrb[14].mxu0 }
 0x158   :  { %v390_v45 = vpack.c.bf16 %v829_v44, %v828_v42  ;;  %v320_v46 = vpop.f32.mrb[15].mxu0 }
 0x159   :  { %v389_v47 = vpack.c.bf16 %v320_v46, %v317_v43 }
 0x15b   :  { %858 = vmatprep.mubr.bf16.mxu1 %v389_v47 }
 0x15c   :  { %859 = vmatmul.mubr.bf16.gmra.mrb[12].mxu1 %v390_v45 }
 0x217   :  { %v848_v49 = vpop.f32.mrb[0].mxu1 }
 0x218   :  { %v505_v50 = vadd.f32 %v848_v49, %v678_v48  ;;  %v496_v51 = vpop.f32.mrb[1].mxu1 }
 0x219   :  { %v497_v52 = vadd.f32 %v678_v48, %v496_v51  ;;  %v849_v53 = vpop.f32.mrb[2].mxu1 }
 0x21a   :  { %v508_v54 = vadd.f32 %v849_v53, %v678_v48  ;;  %v499_v55 = vpop.f32.mrb[3].mxu1  ;;  %v561_v57 = vmax.f32 %v505_v50, 0.0 }
 0x21b   :  { %v500_v56 = vadd.f32 %v678_v48, %v499_v55  ;;  %v559_v59 = vmax.f32 %v497_v52, 0.0 }
 0x21c   :  { %v562_v58 = vmax.f32 %v508_v54, 0.0 }
 0x21d   :  { %v560_v60 = vmax.f32 %v500_v56, 0.0 }
 0x21e   :  { %v727_v61 = vpack.c.bf16 %v562_v58, %v561_v57 }
 0x21f   :  { %v722_v62 = vpack.c.bf16 %v560_v60, %v559_v59  ;;  %v852_v63 = vpop.f32.mrb[4].mxu1 }
 0x220   :  { %759 = vst [vmem:[%s1109_s4 + $0x8] sm:$0xff] %v727_v61   ;;  %v521_v0 = vadd.f32 %v852_v63, %v678_v48  ;;  %v512_v1 = vpop.f32.mrb[5].mxu1 }
 0x221   :  { %723 = vst [vmem:[%s1109_s4] sm:$0xff] %v722_v62   ;;  %v513_v2 = vadd.f32 %v678_v48, %v512_v1  ;;  %v853_v3 = vpop.f32.mrb[6].mxu1 }
 0x222   :  { %v524_v4 = vadd.f32 %v853_v3, %v678_v48  ;;  %v515_v5 = vpop.f32.mrb[7].mxu1  ;;  %v565_v7 = vmax.f32 %v521_v0, 0.0 }
 0x223   :  { %v516_v6 = vadd.f32 %v678_v48, %v515_v5  ;;  %v563_v9 = vmax.f32 %v513_v2, 0.0 }
 0x224   :  { %v566_v8 = vmax.f32 %v524_v4, 0.0 }
 0x225   :  { %v564_v10 = vmax.f32 %v516_v6, 0.0 }
 0x226   :  { %v737_v11 = vpack.c.bf16 %v566_v8, %v565_v7 }
 0x227   :  { %v732_v12 = vpack.c.bf16 %v564_v10, %v563_v9  ;;  %v856_v13 = vpop.f32.mrb[8].mxu1 }
 0x228   :  { %761 = vst [vmem:[%s1109_s4 + $0x18] sm:$0xff] %v737_v11   ;;  %v537_v14 = vadd.f32 %v856_v13, %v678_v48  ;;  %v528_v15 = vpop.f32.mrb[9].mxu1 }
 0x229   :  { %760 = vst [vmem:[%s1109_s4 + $0x10] sm:$0xff] %v732_v12   ;;  %v529_v16 = vadd.f32 %v678_v48, %v528_v15  ;;  %v857_v17 = vpop.f32.mrb[10].mxu1 }
 0x22a   :  { %v540_v18 = vadd.f32 %v857_v17, %v678_v48  ;;  %v531_v19 = vpop.f32.mrb[11].mxu1  ;;  %v569_v21 = vmax.f32 %v537_v14, 0.0 }
 0x22b   :  { %v532_v20 = vadd.f32 %v678_v48, %v531_v19  ;;  %v567_v23 = vmax.f32 %v529_v16, 0.0 }
 0x22c   :  { %v570_v22 = vmax.f32 %v540_v18, 0.0 }
 0x22d   :  { %v568_v24 = vmax.f32 %v532_v20, 0.0 }
 0x22e   :  { %v747_v25 = vpack.c.bf16 %v570_v22, %v569_v21 }
 0x22f   :  { %v742_v26 = vpack.c.bf16 %v568_v24, %v567_v23  ;;  %v860_v27 = vpop.f32.mrb[12].mxu1 }
 0x230   :  { %763 = vst [vmem:[%s1109_s4 + $0x28] sm:$0xff] %v747_v25   ;;  %v553_v28 = vadd.f32 %v860_v27, %v678_v48  ;;  %v544_v29 = vpop.f32.mrb[13].mxu1 }
 0x231   :  { %762 = vst [vmem:[%s1109_s4 + $0x20] sm:$0xff] %v742_v26   ;;  %v545_v30 = vadd.f32 %v678_v48, %v544_v29  ;;  %v861_v31 = vpop.f32.mrb[14].mxu1 }
 0x232   :  { %v556_v32 = vadd.f32 %v861_v31, %v678_v48  ;;  %v547_v33 = vpop.f32.mrb[15].mxu1  ;;  %v573_v35 = vmax.f32 %v553_v28, 0.0 }
 0x233   :  { %v548_v34 = vadd.f32 %v678_v48, %v547_v33  ;;  %v571_v37 = vmax.f32 %v545_v30, 0.0 }
 0x234   :  { %v574_v36 = vmax.f32 %v556_v32, 0.0 }
 0x235   :  { %v572_v38 = vmax.f32 %v548_v34, 0.0 }
 0x236   :  { %v757_v39 = vpack.c.bf16 %v574_v36, %v573_v35 }
 0x237   :  { %v752_v40 = vpack.c.bf16 %v572_v38, %v571_v37 }
 0x238   :  { %765 = vst [vmem:[%s1109_s4 + $0x38] sm:$0xff] %v757_v39  }
 0x239   :  { %764 = vst [vmem:[%s1109_s4 + $0x30] sm:$0xff] %v752_v40  }
 0x23a   :  { %659 = vsyncpa [#allocation4], 1 }
 0x23b   :  { %660 = vsyncpa [#allocation6], 1 }
 0x23c   :  { %661 = vsyncpa [#allocation9], 1 }

// kernel: gcn_forward.4
= control target key start
LH: loop header
LB: loop body
LE: loop exit
PB: predicated region body
PF: predicated region fallthrough
CT: control target
= control target key end

     0   :  { %s954_s1 = inlined_call_operand.vmem [shape: bf16[128,128], index: 1, kind: input, shape index: {}]   ;;  %s955_s0 = inlined_call_operand.vmem [shape: bf16[128,128], index: 0, kind: input, shape index: {}]   ;;  %s956_s2 = inlined_call_operand.vmem [shape: bf16[128,128], index: 2, kind: input, shape index: {}]   ;;  %s957_s3 = inlined_call_operand.vmem [shape: f32[1,128], index: 3, kind: input, shape index: {}]   ;;  %s958_s4 = inlined_call_operand.vmem [shape: bf16[128,128], index: 4, kind: output, shape index: {}]  }
   0x1   :  { %v806_v0 = vld [vmem:[%s954_s1] sm:$0xff]   ;;  %v807_v1 = vld [vmem:[%s954_s1 + $0x8] sm:$0xff]   ;;  %v808_v2 = vld [vmem:[%s954_s1 + $0x10] sm:$0xff]  }
   0x2   :  { %742 = vmatprep.subr.bf16.mxu0 %v806_v0  ;;  %v809_v3 = vld [vmem:[%s954_s1 + $0x18] sm:$0xff]   ;;  %v814_v4 = vld [vmem:[%s955_s0] sm:$0xff]   ;;  %v811_v6 = vld [vmem:[%s954_s1 + $0x28] sm:$0xff]  }
   0x3   :  { %743 = vmatpush3.bf16.msra.mxu0 %v806_v0  ;;  %758 = vmatprep.mubr.bf16.mxu0 %v814_v4  ;;  %v810_v5 = vld [vmem:[%s954_s1 + $0x20] sm:$0xff]   ;;  %v823_v8 = vld [vmem:[%s956_s2 + $0x8] sm:$0xff]   ;;  %v812_v9 = vld [vmem:[%s954_s1 + $0x30] sm:$0xff]  }
   0x4   :  { %744 = vmatprep.subr.bf16.mxu0 %v807_v1  ;;  %v822_v7 = vld [vmem:[%s956_s2] sm:$0xff]   ;;  %v824_v10 = vld [vmem:[%s956_s2 + $0x10] sm:$0xff]   ;;  %v813_v11 = vld [vmem:[%s954_s1 + $0x38] sm:$0xff]  }
   0x5   :  { %774 = vmatprep.subr.bf16.mxu1 %v822_v7  ;;  %v825_v12 = vld [vmem:[%s956_s2 + $0x18] sm:$0xff]   ;;  %v826_v13 = vld [vmem:[%s956_s2 + $0x20] sm:$0xff]   ;;  %v815_v14 = vld [vmem:[%s955_s0 + $0x8] sm:$0xff]  }
   0x6   :  { %775 = vmatpush3.bf16.msra.mxu1 %v822_v7  ;;  %v816_v15 = vld [vmem:[%s955_s0 + $0x10] sm:$0xff]   ;;  %v827_v16 = vld [vmem:[%s956_s2 + $0x28] sm:$0xff]   ;;  %v817_v18 = vld [vmem:[%s955_s0 + $0x18] sm:$0xff]  }
   0x7   :  { %745 = vmatpush3.bf16.msra.mxu0 %v807_v1  ;;  %776 = vmatprep.subr.bf16.mxu1 %v823_v8  ;;  %v828_v17 = vld [vmem:[%s956_s2 + $0x30] sm:$0xff]   ;;  %v818_v19 = vld [vmem:[%s955_s0 + $0x20] sm:$0xff]   ;;  %v819_v20 = vld [vmem:[%s955_s0 + $0x28] sm:$0xff]  }
   0x8   :  { %746 = vmatprep.subr.bf16.mxu0 %v808_v2  ;;  %v820_v21 = vld [vmem:[%s955_s0 + $0x30] sm:$0xff]   ;;  %v821_v22 = vld [vmem:[%s955_s0 + $0x38] sm:$0xff]   ;;  %v622_v48 = vld [vmem:[%s957_s3] ss:$0 sm:$0xff] }
   0x9   :  { %v829_v23 = vld [vmem:[%s956_s2 + $0x38] sm:$0xff]  }
   0xa   :  { %777 = vmatpush3.bf16.msra.mxu1 %v823_v8 }
   0xb   :  { %747 = vmatpush3.bf16.msra.mxu0 %v808_v2  ;;  %778 = vmatprep.subr.bf16.mxu1 %v824_v10 }
   0xc   :  { %748 = vmatprep.subr.bf16.mxu0 %v809_v3 }
   0xe   :  { %779 = vmatpush3.bf16.msra.mxu1 %v824_v10 }
   0xf   :  { %749 = vmatpush3.bf16.msra.mxu0 %v809_v3  ;;  %780 = vmatprep.subr.bf16.mxu1 %v825_v12 }
  0x10   :  { %750 = vmatprep.subr.bf16.mxu0 %v810_v5 }
  0x12   :  { %781 = vmatpush3.bf16.msra.mxu1 %v825_v12 }
  0x13   :  { %751 = vmatpush3.bf16.msra.mxu0 %v810_v5  ;;  %782 = vmatprep.subr.bf16.mxu1 %v826_v13 }
  0x14   :  { %752 = vmatprep.subr.bf16.mxu0 %v811_v6 }
  0x16   :  { %783 = vmatpush3.bf16.msra.mxu1 %v826_v13 }
  0x17   :  { %753 = vmatpush3.bf16.msra.mxu0 %v811_v6  ;;  %784 = vmatprep.subr.bf16.mxu1 %v827_v16 }
  0x18   :  { %754 = vmatprep.subr.bf16.mxu0 %v812_v9 }
  0x1a   :  { %785 = vmatpush3.bf16.msra.mxu1 %v827_v16 }
  0x1b   :  { %755 = vmatpush3.bf16.msra.mxu0 %v812_v9  ;;  %786 = vmatprep.subr.bf16.mxu1 %v828_v17 }
  0x1c   :  { %756 = vmatprep.subr.bf16.mxu0 %v813_v11 }
  0x1e   :  { %787 = vmatpush3.bf16.msra.mxu1 %v828_v17 }
  0x1f   :  { %757 = vmatpush3.bf16.msra.mxu0 %v813_v11  ;;  %788 = vmatprep.subr.bf16.mxu1 %v829_v23 }
  0x22   :  { %759 = vmatmul.mubr.bf16.vlgmr.msra.gmra.mrb[0].mxu0 %v815_v14  ;;  %789 = vmatpush3.bf16.msra.mxu1 %v829_v23 }
  0x23   :  { %762 = vmatprep.mubr.bf16.mxu0 %v816_v15 }
  0x2a   :  { %763 = vmatmul.mubr.bf16.gmra.mrb[4].mxu0 %v817_v18 }
  0x2b   :  { %766 = vmatprep.mubr.bf16.mxu0 %v818_v19 }
  0x32   :  { %767 = vmatmul.mubr.bf16.gmra.mrb[8].mxu0 %v819_v20 }
  0x33   :  { %770 = vmatprep.mubr.bf16.mxu0 %v820_v21 }
  0x3a   :  { %771 = vmatmul.mubr.bf16.gmra.mrb[12].mxu0 %v821_v22 }
  0xf5   :  { %v760_v24 = vpop.f32.mrb[0].mxu0 }
  0xf6   :  { %v216_v25 = vpop.f32.mrb[1].mxu0 }
  0xf7   :  { %v761_v26 = vpop.f32.mrb[2].mxu0 }
  0xf8   :  { %v331_v27 = vpack.c.bf16 %v761_v26, %v760_v24  ;;  %v219_v28 = vpop.f32.mrb[3].mxu0 }
  0xf9   :  { %v330_v29 = vpack.c.bf16 %v219_v28, %v216_v25 }
  0xfb   :  { %790 = vmatprep.mubr.bf16.mxu1 %v330_v29 }
  0xfc   :  { %791 = vmatmul.mubr.bf16.vlgmr.msra.gmra.mrb[0].mxu1 %v331_v27 }
  0xfd   :  { %v764_v30 = vpop.f32.mrb[4].mxu0 }
  0xfe   :  { %v232_v31 = vpop.f32.mrb[5].mxu0 }
  0xff   :  { %v765_v32 = vpop.f32.mrb[6].mxu0 }
 0x100   :  { %v333_v33 = vpack.c.bf16 %v765_v32, %v764_v30  ;;  %v235_v34 = vpop.f32.mrb[7].mxu0 }
 0x101   :  { %v332_v35 = vpack.c.bf16 %v235_v34, %v232_v31 }
 0x103   :  { %794 = vmatprep.mubr.bf16.mxu1 %v332_v35 }
 0x104   :  { %795 = vmatmul.mubr.bf16.gmra.mrb[4].mxu1 %v333_v33 }
 0x105   :  { %v768_v36 = vpop.f32.mrb[8].mxu0 }
 0x106   :  { %v248_v37 = vpop.f32.mrb[9].mxu0 }
 0x107   :  { %v769_v38 = vpop.f32.mrb[10].mxu0 }
 0x108   :  { %v335_v39 = vpack.c.bf16 %v769_v38, %v768_v36  ;;  %v251_v40 = vpop.f32.mrb[11].mxu0 }
 0x109   :  { %v334_v41 = vpack.c.bf16 %v251_v40, %v248_v37 }
 0x10b   :  { %798 = vmatprep.mubr.bf16.mxu1 %v334_v41 }
 0x10c   :  { %799 = vmatmul.mubr.bf16.gmra.mrb[8].mxu1 %v335_v39 }
 0x10d   :  { %v772_v42 = vpop.f32.mrb[12].mxu0 }
 0x10e   :  { %v264_v43 = vpop.f32.mrb[13].mxu0 }
 0x10f   :  { %v773_v44 = vpop.f32.mrb[14].mxu0 }
 0x110   :  { %v337_v45 = vpack.c.bf16 %v773_v44, %v772_v42  ;;  %v267_v46 = vpop.f32.mrb[15].mxu0 }
 0x111   :  { %v336_v47 = vpack.c.bf16 %v267_v46, %v264_v43 }
 0x113   :  { %802 = vmatprep.mubr.bf16.mxu1 %v336_v47 }
 0x114   :  { %803 = vmatmul.mubr.bf16.gmra.mrb[12].mxu1 %v337_v45 }
 0x1cf   :  { %v792_v49 = vpop.f32.mrb[0].mxu1 }
 0x1d0   :  { %v452_v50 = vadd.f32 %v792_v49, %v622_v48  ;;  %v443_v51 = vpop.f32.mrb[1].mxu1 }
 0x1d1   :  { %v444_v52 = vadd.f32 %v622_v48, %v443_v51  ;;  %v793_v53 = vpop.f32.mrb[2].mxu1 }
 0x1d2   :  { %v455_v54 = vadd.f32 %v793_v53, %v622_v48  ;;  %v446_v55 = vpop.f32.mrb[3].mxu1  ;;  %v508_v57 = vmax.f32 %v452_v50, 0.0 }
 0x1d3   :  { %v447_v56 = vadd.f32 %v622_v48, %v446_v55  ;;  %v506_v59 = vmax.f32 %v444_v52, 0.0 }
 0x1d4   :  { %v509_v58 = vmax.f32 %v455_v54, 0.0 }
 0x1d5   :  { %v507_v60 = vmax.f32 %v447_v56, 0.0 }
 0x1d6   :  { %v671_v61 = vpack.c.bf16 %v509_v58, %v508_v57 }
 0x1d7   :  { %v666_v62 = vpack.c.bf16 %v507_v60, %v506_v59  ;;  %v796_v63 = vpop.f32.mrb[4].mxu1 }
 0x1d8   :  { %703 = vst [vmem:[%s958_s4 + $0x8] sm:$0xff] %v671_v61   ;;  %v468_v0 = vadd.f32 %v796_v63, %v622_v48  ;;  %v459_v1 = vpop.f32.mrb[5].mxu1 }
 0x1d9   :  { %667 = vst [vmem:[%s958_s4] sm:$0xff] %v666_v62   ;;  %v460_v2 = vadd.f32 %v622_v48, %v459_v1  ;;  %v797_v3 = vpop.f32.mrb[6].mxu1 }
 0x1da   :  { %v471_v4 = vadd.f32 %v797_v3, %v622_v48  ;;  %v462_v5 = vpop.f32.mrb[7].mxu1  ;;  %v512_v7 = vmax.f32 %v468_v0, 0.0 }
 0x1db   :  { %v463_v6 = vadd.f32 %v622_v48, %v462_v5  ;;  %v510_v9 = vmax.f32 %v460_v2, 0.0 }
 0x1dc   :  { %v513_v8 = vmax.f32 %v471_v4, 0.0 }
 0x1dd   :  { %v511_v10 = vmax.f32 %v463_v6, 0.0 }
 0x1de   :  { %v681_v11 = vpack.c.bf16 %v513_v8, %v512_v7 }
 0x1df   :  { %v676_v12 = vpack.c.bf16 %v511_v10, %v510_v9  ;;  %v800_v13 = vpop.f32.mrb[8].mxu1 }
 0x1e0   :  { %705 = vst [vmem:[%s958_s4 + $0x18] sm:$0xff] %v681_v11   ;;  %v484_v14 = vadd.f32 %v800_v13, %v622_v48  ;;  %v475_v15 = vpop.f32.mrb[9].mxu1 }
 0x1e1   :  { %704 = vst [vmem:[%s958_s4 + $0x10] sm:$0xff] %v676_v12   ;;  %v476_v16 = vadd.f32 %v622_v48, %v475_v15  ;;  %v801_v17 = vpop.f32.mrb[10].mxu1 }
 0x1e2   :  { %v487_v18 = vadd.f32 %v801_v17, %v622_v48  ;;  %v478_v19 = vpop.f32.mrb[11].mxu1  ;;  %v516_v21 = vmax.f32 %v484_v14, 0.0 }
 0x1e3   :  { %v479_v20 = vadd.f32 %v622_v48, %v478_v19  ;;  %v514_v23 = vmax.f32 %v476_v16, 0.0 }
 0x1e4   :  { %v517_v22 = vmax.f32 %v487_v18, 0.0 }
 0x1e5   :  { %v515_v24 = vmax.f32 %v479_v20, 0.0 }
 0x1e6   :  { %v691_v25 = vpack.c.bf16 %v517_v22, %v516_v21 }
 0x1e7   :  { %v686_v26 = vpack.c.bf16 %v515_v24, %v514_v23  ;;  %v804_v27 = vpop.f32.mrb[12].mxu1 }
 0x1e8   :  { %707 = vst [vmem:[%s958_s4 + $0x28] sm:$0xff] %v691_v25   ;;  %v500_v28 = vadd.f32 %v804_v27, %v622_v48  ;;  %v491_v29 = vpop.f32.mrb[13].mxu1 }
 0x1e9   :  { %706 = vst [vmem:[%s958_s4 + $0x20] sm:$0xff] %v686_v26   ;;  %v492_v30 = vadd.f32 %v622_v48, %v491_v29  ;;  %v805_v31 = vpop.f32.mrb[14].mxu1 }
 0x1ea   :  { %v503_v32 = vadd.f32 %v805_v31, %v622_v48  ;;  %v494_v33 = vpop.f32.mrb[15].mxu1  ;;  %v520_v35 = vmax.f32 %v500_v28, 0.0 }
 0x1eb   :  { %v495_v34 = vadd.f32 %v622_v48, %v494_v33  ;;  %v518_v37 = vmax.f32 %v492_v30, 0.0 }
 0x1ec   :  { %v521_v36 = vmax.f32 %v503_v32, 0.0 }
 0x1ed   :  { %v519_v38 = vmax.f32 %v495_v34, 0.0 }
 0x1ee   :  { %v701_v39 = vpack.c.bf16 %v521_v36, %v520_v35 }
 0x1ef   :  { %v696_v40 = vpack.c.bf16 %v519_v38, %v518_v37 }
 0x1f0   :  { %709 = vst [vmem:[%s958_s4 + $0x38] sm:$0xff] %v701_v39  }
 0x1f1   :  { %708 = vst [vmem:[%s958_s4 + $0x30] sm:$0xff] %v696_v40  }

// kernel: gcn_forward.5
= control target key start
LH: loop header
LB: loop body
LE: loop exit
PB: predicated region body
PF: predicated region fallthrough
CT: control target
= control target key end

     0   :  { %s1378_s0 = inlined_call_operand.vmem [shape: bf16[128,128], index: 0, kind: input, shape index: {}]   ;;  %s1379_s1 = inlined_call_operand.vmem [shape: bf16[128,128], index: 1, kind: input, shape index: {}]   ;;  %s1380_s2 = inlined_call_operand.vmem [shape: bf16[128,128], index: 2, kind: input, shape index: {}]   ;;  %s1381_s3 = inlined_call_operand.vmem [shape: f32[1,128], index: 3, kind: input, shape index: {}]   ;;  %s1382_s4 = inlined_call_operand.vmem [shape: bf16[8,128], index: 4, kind: input, shape index: {}]   ;;  %s1383_s5 = inlined_call_operand.vmem [shape: bf16[128,128], index: 5, kind: input, shape index: {}]   ;;  %s1384_s6 = inlined_call_operand.vmem [shape: f32[1,128], index: 6, kind: input, shape index: {}]   ;;  %s1385_s7 = inlined_call_operand.vmem [shape: bf16[128,128], index: 7, kind: input, shape index: {}]   ;;  %s1386_s8 = inlined_call_operand.vmem [shape: f32[1,128], index: 8, kind: input, shape index: {}]   ;;  %s1387_s9 = inlined_call_operand.hbm [shape: f32[8,128], index: 9, kind: output, shape index: {}]  }
   0x1   :  { %v1083_v0 = vld [vmem:[%s1379_s1] sm:$0xff]   ;;  %v1084_v1 = vld [vmem:[%s1379_s1 + $0x8] sm:$0xff]   ;;  %v1085_v2 = vld [vmem:[%s1379_s1 + $0x10] sm:$0xff]  }
   0x2   :  { %956 = vmatprep.subr.bf16.mxu0 %v1083_v0  ;;  %v1086_v3 = vld [vmem:[%s1379_s1 + $0x18] sm:$0xff]   ;;  %v1091_v4 = vld [vmem:[%s1378_s0] sm:$0xff]   ;;  %v1088_v6 = vld [vmem:[%s1379_s1 + $0x28] sm:$0xff]  }
   0x3   :  { %957 = vmatpush3.bf16.msra.mxu0 %v1083_v0  ;;  %972 = vmatprep.mubr.bf16.mxu0 %v1091_v4  ;;  %v1087_v5 = vld [vmem:[%s1379_s1 + $0x20] sm:$0xff]   ;;  %v1100_v8 = vld [vmem:[%s1380_s2 + $0x8] sm:$0xff]   ;;  %v1089_v9 = vld [vmem:[%s1379_s1 + $0x30] sm:$0xff]  }
   0x4   :  { %958 = vmatprep.subr.bf16.mxu0 %v1084_v1  ;;  %v1099_v7 = vld [vmem:[%s1380_s2] sm:$0xff]   ;;  %v1101_v10 = vld [vmem:[%s1380_s2 + $0x10] sm:$0xff]   ;;  %v1090_v11 = vld [vmem:[%s1379_s1 + $0x38] sm:$0xff]  }
   0x5   :  { %988 = vmatprep.subr.bf16.mxu1 %v1099_v7  ;;  %v1102_v12 = vld [vmem:[%s1380_s2 + $0x18] sm:$0xff]   ;;  %v1103_v13 = vld [vmem:[%s1380_s2 + $0x20] sm:$0xff]   ;;  %v1092_v14 = vld [vmem:[%s1378_s0 + $0x8] sm:$0xff]  }
   0x6   :  { %989 = vmatpush3.bf16.msra.mxu1 %v1099_v7  ;;  %v1093_v15 = vld [vmem:[%s1378_s0 + $0x10] sm:$0xff]   ;;  %v1104_v16 = vld [vmem:[%s1380_s2 + $0x28] sm:$0xff]  }
   0x7   :  { %959 = vmatpush3.bf16.msra.mxu0 %v1084_v1  ;;  %990 = vmatprep.subr.bf16.mxu1 %v1100_v8 }
   0x8   :  { %960 = vmatprep.subr.bf16.mxu0 %v1085_v2 }
   0xa   :  { %991 = vmatpush3.bf16.msra.mxu1 %v1100_v8 }
   0xb   :  { %961 = vmatpush3.bf16.msra.mxu0 %v1085_v2  ;;  %992 = vmatprep.subr.bf16.mxu1 %v1101_v10 }
   0xc   :  { %962 = vmatprep.subr.bf16.mxu0 %v1086_v3 }
   0xe   :  { %993 = vmatpush3.bf16.msra.mxu1 %v1101_v10 }
   0xf   :  { %963 = vmatpush3.bf16.msra.mxu0 %v1086_v3  ;;  %994 = vmatprep.subr.bf16.mxu1 %v1102_v12 }
  0x10   :  { %964 = vmatprep.subr.bf16.mxu0 %v1087_v5 }
  0x12   :  { %995 = vmatpush3.bf16.msra.mxu1 %v1102_v12 }
  0x13   :  { %965 = vmatpush3.bf16.msra.mxu0 %v1087_v5  ;;  %996 = vmatprep.subr.bf16.mxu1 %v1103_v13 }
  0x14   :  { %966 = vmatprep.subr.bf16.mxu0 %v1088_v6 }
  0x17   :  { %967 = vmatpush3.bf16.msra.mxu0 %v1088_v6 }
  0x18   :  { %968 = vmatprep.subr.bf16.mxu0 %v1089_v9 }
  0x1b   :  { %969 = vmatpush3.bf16.msra.mxu0 %v1089_v9 }
  0x1c   :  { %970 = vmatprep.subr.bf16.mxu0 %v1090_v11 }
  0x1f   :  { %971 = vmatpush3.bf16.msra.mxu0 %v1090_v11 }
  0x22   :  { %973 = vmatmul.mubr.bf16.vlgmr.msra.gmra.mrb[0].mxu0 %v1092_v14 }
  0x23   :  { %14 = vsyncpa [#allocation5], 0  ;;  %976 = vmatprep.mubr.bf16.mxu0 %v1093_v15  ;;  %997 = vmatpush3.bf16.msra.mxu1 %v1103_v13  ;;  %v1105_v17 = vld [vmem:[%s1380_s2 + $0x30] sm:$0xff]   ;;  %v1094_v18 = vld [vmem:[%s1378_s0 + $0x18] sm:$0xff]   ;;  %v1151_v48 = vmov 0.0   ;;  %vm1152_vm0 = vmmov 0  }
  0x24   :  { %998 = vmatprep.subr.bf16.mxu1 %v1104_v16  ;;  %v1095_v19 = vld [vmem:[%s1378_s0 + $0x20] sm:$0xff]   ;;  %v1096_v20 = vld [vmem:[%s1378_s0 + $0x28] sm:$0xff]   ;;  %v1097_v21 = vld [vmem:[%s1378_s0 + $0x30] sm:$0xff]   ;;  %1020 = vmatprep.subr.bf16.mxu0 %v1151_v48 }
  0x25   :  { %v1098_v22 = vld [vmem:[%s1378_s0 + $0x38] sm:$0xff]   ;;  %v1107_v49 = vld [vmem:[%s1383_s5] sm:$0xff]   ;;  %v1108_v50 = vld [vmem:[%s1383_s5 + $0x8] sm:$0xff]  }
  0x26   :  { %v1106_v23 = vld [vmem:[%s1380_s2 + $0x38] sm:$0xff]   ;;  %v1109_v51 = vld [vmem:[%s1383_s5 + $0x10] sm:$0xff]   ;;  %v1111_v53 = vld [vmem:[%s1383_s5 + $0x20] sm:$0xff]  }
  0x27   :  { %999 = vmatpush3.bf16.msra.mxu1 %v1104_v16  ;;  %v1110_v52 = vld [vmem:[%s1383_s5 + $0x18] sm:$0xff]   ;;  %v1112_v54 = vld [vmem:[%s1383_s5 + $0x28] sm:$0xff]   ;;  %v1113_v55 = vld [vmem:[%s1383_s5 + $0x30] sm:$0xff]  }
  0x28   :  { %1000 = vmatprep.subr.bf16.mxu1 %v1105_v17  ;;  %v870_v56 = vld [vmem:[%s1381_s3] ss:$0 sm:$0xff] }
  0x2a   :  { %977 = vmatmul.mubr.bf16.gmra.mrb[4].mxu0 %v1094_v18 }
  0x2b   :  { %980 = vmatprep.mubr.bf16.mxu0 %v1095_v19  ;;  %1001 = vmatpush3.bf16.msra.mxu1 %v1105_v17 }
  0x2c   :  { %1002 = vmatprep.subr.bf16.mxu1 %v1106_v23 }
  0x2f   :  { %1003 = vmatpush3.bf16.msra.mxu1 %v1106_v23 }
  0x30   :  { %1040 = vmatprep.subr.bf16.mxu1 %v1151_v48 }
  0x32   :  { %981 = vmatmul.mubr.bf16.gmra.mrb[8].mxu0 %v1096_v20 }
  0x33   :  { %984 = vmatprep.mubr.bf16.mxu0 %v1097_v21 }
  0x3a   :  { %985 = vmatmul.mubr.bf16.gmra.mrb[12].mxu0 %v1098_v22 }
  0x3b   :  { %1036 = vmatprep.mubr.msk.bf16.mxu0 %vm1152_vm0, %v1151_v48 }
  0xf5   :  { %v974_v24 = vpop.f32.mrb[0].mxu0 }
  0xf6   :  { %v238_v25 = vpop.f32.mrb[1].mxu0 }
  0xf7   :  { %v975_v26 = vpop.f32.mrb[2].mxu0 }
  0xf8   :  { %v353_v27 = vpack.c.bf16 %v975_v26, %v974_v24  ;;  %v241_v28 = vpop.f32.mrb[3].mxu0 }
  0xf9   :  { %v352_v29 = vpack.c.bf16 %v241_v28, %v238_v25 }
  0xfb   :  { %1004 = vmatprep.mubr.bf16.mxu1 %v352_v29 }
  0xfc   :  { %1005 = vmatmul.mubr.bf16.vlgmr.msra.gmra.mrb[0].mxu1 %v353_v27 }
  0xfd   :  { %v978_v30 = vpop.f32.mrb[4].mxu0  ;;  %1041 = vmatpush3.bf16.msra.mxu1 %v1107_v49 }
  0xfe   :  { %v254_v31 = vpop.f32.mrb[5].mxu0  ;;  %1042 = vmatprep.subr.bf16.mxu1 %v1151_v48 }
  0xff   :  { %v979_v32 = vpop.f32.mrb[6].mxu0 }
 0x100   :  { %v355_v33 = vpack.c.bf16 %v979_v32, %v978_v30  ;;  %v257_v34 = vpop.f32.mrb[7].mxu0 }
 0x101   :  { %v354_v35 = vpack.c.bf16 %v257_v34, %v254_v31  ;;  %1043 = vmatpush3.bf16.msra.mxu1 %v1108_v50  ;;  %v545_v50 = vld [vmem:[%s1382_s4] sm:$0xf] }
 0x102   :  { %1044 = vmatprep.subr.bf16.mxu1 %v1151_v48 }
 0x103   :  { %1008 = vmatprep.mubr.bf16.mxu1 %v354_v35 }
 0x104   :  { %1009 = vmatmul.mubr.bf16.gmra.mrb[4].mxu1 %v355_v33 }
 0x105   :  { %v982_v36 = vpop.f32.mrb[8].mxu0  ;;  %1045 = vmatpush3.bf16.msra.mxu1 %v1109_v51  ;;  %v1114_v51 = vld [vmem:[%s1383_s5 + $0x38] sm:$0xff]  }
 0x106   :  { %v270_v37 = vpop.f32.mrb[9].mxu0  ;;  %1046 = vmatprep.subr.bf16.mxu1 %v1151_v48 }
 0x107   :  { %v983_v38 = vpop.f32.mrb[10].mxu0 }
 0x108   :  { %v357_v39 = vpack.c.bf16 %v983_v38, %v982_v36  ;;  %v273_v40 = vpop.f32.mrb[11].mxu0 }
 0x109   :  { %v356_v41 = vpack.c.bf16 %v273_v40, %v270_v37  ;;  %1047 = vmatpush3.bf16.msra.mxu1 %v1110_v52  ;;  %v1115_v52 = vld [vmem:[%s1385_s7] sm:$0xff]  }
 0x10a   :  { %1048 = vmatprep.subr.bf16.mxu1 %v1151_v48 }
 0x10b   :  { %1012 = vmatprep.mubr.bf16.mxu1 %v356_v41 }
 0x10c   :  { %1013 = vmatmul.mubr.bf16.gmra.mrb[8].mxu1 %v357_v39 }
 0x10d   :  { %v986_v42 = vpop.f32.mrb[12].mxu0  ;;  %1049 = vmatpush3.bf16.msra.mxu1 %v1111_v53  ;;  %v1116_v53 = vld [vmem:[%s1385_s7 + $0x8] sm:$0xff]  }
 0x10e   :  { %v286_v43 = vpop.f32.mrb[13].mxu0  ;;  %1050 = vmatprep.subr.bf16.mxu1 %v1151_v48 }
 0x10f   :  { %v987_v44 = vpop.f32.mrb[14].mxu0 }
 0x110   :  { %v359_v45 = vpack.c.bf16 %v987_v44, %v986_v42  ;;  %v289_v46 = vpop.f32.mrb[15].mxu0 }
 0x111   :  { %v358_v47 = vpack.c.bf16 %v289_v46, %v286_v43  ;;  %1051 = vmatpush3.bf16.msra.mxu1 %v1112_v54  ;;  %v1117_v54 = vld [vmem:[%s1385_s7 + $0x10] sm:$0xff]  }
 0x112   :  { %1052 = vmatprep.subr.bf16.mxu1 %v1151_v48 }
 0x113   :  { %1016 = vmatprep.mubr.bf16.mxu1 %v358_v47 }
 0x114   :  { %1017 = vmatmul.mubr.bf16.gmra.mrb[12].mxu1 %v359_v45 }
 0x115   :  { %1056 = vmatprep.mubr.msk.bf16.mxu1 %vm1152_vm0, %v1151_v48  ;;  %1053 = vmatpush3.bf16.msra.mxu1 %v1113_v55  ;;  %v1118_v55 = vld [vmem:[%s1385_s7 + $0x18] sm:$0xff]  }
 0x116   :  { %1054 = vmatprep.subr.bf16.mxu1 %v1151_v48 }
 0x119   :  { %1055 = vmatpush3.bf16.msra.mxu1 %v1114_v51 }
 0x1cf   :  { %v1006_v57 = vpop.f32.mrb[0].mxu1 }
 0x1d0   :  { %v474_v58 = vadd.f32 %v1006_v57, %v870_v56  ;;  %v465_v59 = vpop.f32.mrb[1].mxu1  ;;  %v1120_v57 = vld [vmem:[%s1385_s7 + $0x28] sm:$0xff]  }
 0x1d1   :  { %v466_v60 = vadd.f32 %v870_v56, %v465_v59  ;;  %v1007_v61 = vpop.f32.mrb[2].mxu1 }
 0x1d2   :  { %v477_v62 = vadd.f32 %v1007_v61, %v870_v56  ;;  %v468_v63 = vpop.f32.mrb[3].mxu1  ;;  %v530_v1 = vmax.f32 %v474_v58, 0.0 }
 0x1d3   :  { %v469_v0 = vadd.f32 %v870_v56, %v468_v63  ;;  %v528_v3 = vmax.f32 %v466_v60, 0.0  ;;  %v1121_v63 = vld [vmem:[%s1385_s7 + $0x30] sm:$0xff]  }
 0x1d4   :  { %v531_v2 = vmax.f32 %v477_v62, 0.0 }
 0x1d5   :  { %v529_v4 = vmax.f32 %v469_v0, 0.0  ;;  %v1122_v0 = vld [vmem:[%s1385_s7 + $0x38] sm:$0xff]  }
 0x1d6   :  { %v547_v5 = vpack.c.bf16 %v531_v2, %v530_v1  ;;  %v879_v1 = vld [vmem:[%s1384_s6] ss:$0 sm:$0xff]  ;;  %s1153_s6 = smov [#allocation4]  }
 0x1d7   :  { %v546_v6 = vpack.c.bf16 %v529_v4, %v528_v3  ;;  %v1010_v7 = vpop.f32.mrb[4].mxu1 }
 0x1d8   :  { %v490_v8 = vadd.f32 %v1010_v7, %v870_v56  ;;  %v481_v9 = vpop.f32.mrb[5].mxu1 }
 0x1d9   :  { %v482_v10 = vadd.f32 %v870_v56, %v481_v9  ;;  %v1011_v11 = vpop.f32.mrb[6].mxu1  ;;  %1021 = vmatpush3.bf16.msra.mxu0 %v546_v6  ;;  %v824_v9 = vlaneseq }
 0x1da   :  { %v493_v12 = vadd.f32 %v1011_v11, %v870_v56  ;;  %v484_v13 = vpop.f32.mrb[7].mxu1  ;;  %1022 = vmatprep.subr.bf16.mxu0 %v1151_v48  ;;  %v534_v15 = vmax.f32 %v490_v8, 0.0 }
 0x1db   :  { %v485_v14 = vadd.f32 %v870_v56, %v484_v13  ;;  %v532_v17 = vmax.f32 %v482_v10, 0.0  ;;  %v825_v10 = vand.u32 127, %v824_v9 }
 0x1dc   :  { %v535_v16 = vmax.f32 %v493_v12, 0.0 }
 0x1dd   :  { %v533_v18 = vmax.f32 %v485_v14, 0.0  ;;  %1023 = vmatpush3.bf16.msra.mxu0 %v547_v5  ;;  %vm826_vm1 = vcmp.lt.s32.totalorder %v825_v10, 4 }
 0x1de   :  { %v549_v19 = vpack.c.bf16 %v535_v16, %v534_v15  ;;  %1024 = vmatprep.subr.bf16.mxu0 %v1151_v48 }
 0x1df   :  { %v548_v20 = vpack.c.bf16 %v533_v18, %v532_v17  ;;  %v1014_v21 = vpop.f32.mrb[8].mxu1 }
 0x1e0   :  { %v506_v22 = vadd.f32 %v1014_v21, %v870_v56  ;;  %v497_v23 = vpop.f32.mrb[9].mxu1 }
 0x1e1   :  { %v498_v24 = vadd.f32 %v870_v56, %v497_v23  ;;  %v1015_v25 = vpop.f32.mrb[10].mxu1  ;;  %1025 = vmatpush3.bf16.msra.mxu0 %v548_v20 }
 0x1e2   :  { %v509_v26 = vadd.f32 %v1015_v25, %v870_v56  ;;  %v500_v27 = vpop.f32.mrb[11].mxu1  ;;  %1026 = vmatprep.subr.bf16.mxu0 %v1151_v48  ;;  %v538_v29 = vmax.f32 %v506_v22, 0.0 }
 0x1e3   :  { %v501_v28 = vadd.f32 %v870_v56, %v500_v27  ;;  %v536_v31 = vmax.f32 %v498_v24, 0.0 }
 0x1e4   :  { %v539_v30 = vmax.f32 %v509_v26, 0.0 }
 0x1e5   :  { %v537_v32 = vmax.f32 %v501_v28, 0.0  ;;  %1027 = vmatpush3.bf16.msra.mxu0 %v549_v19 }
 0x1e6   :  { %v551_v33 = vpack.c.bf16 %v539_v30, %v538_v29  ;;  %1028 = vmatprep.subr.bf16.mxu0 %v1151_v48 }
 0x1e7   :  { %v550_v34 = vpack.c.bf16 %v537_v32, %v536_v31  ;;  %v1018_v35 = vpop.f32.mrb[12].mxu1 }
 0x1e8   :  { %v522_v36 = vadd.f32 %v1018_v35, %v870_v56  ;;  %v513_v37 = vpop.f32.mrb[13].mxu1 }
 0x1e9   :  { %v514_v38 = vadd.f32 %v870_v56, %v513_v37  ;;  %v1019_v39 = vpop.f32.mrb[14].mxu1  ;;  %1029 = vmatpush3.bf16.msra.mxu0 %v550_v34 }
 0x1ea   :  { %v525_v40 = vadd.f32 %v1019_v39, %v870_v56  ;;  %v516_v41 = vpop.f32.mrb[15].mxu1  ;;  %1030 = vmatprep.subr.bf16.mxu0 %v1151_v48  ;;  %v542_v43 = vmax.f32 %v522_v36, 0.0 }
 0x1eb   :  { %v517_v42 = vadd.f32 %v870_v56, %v516_v41  ;;  %v540_v45 = vmax.f32 %v514_v38, 0.0  ;;  %v1119_v56 = vld [vmem:[%s1385_s7 + $0x20] sm:$0xff]   ;;  %s846_s7 = sshll.u32 %s1153_s6, 4  ;;  %s847_s7 = int_to_ptr.vmem [resolvable:$true] %s846_s7 }
 0x1ec   :  { %v543_v44 = vmax.f32 %v525_v40, 0.0  ;;  %p1132_p1 = scmp.lt.s32.totalorder %s847_s7, %s847_s7 }
 0x1ed   :  { %v541_v46 = vmax.f32 %v517_v42, 0.0  ;;  %1031 = vmatpush3.bf16.msra.mxu0 %v551_v33 }
 0x1ee   :  { %v553_v47 = vpack.c.bf16 %v543_v44, %v542_v43  ;;  %1032 = vmatprep.subr.bf16.mxu0 %v1151_v48 }
 0x1ef   :  { %v552_v49 = vpack.c.bf16 %v541_v46, %v540_v45 }
 0x1f1   :  { %1033 = vmatpush3.bf16.msra.mxu0 %v552_v49 }
 0x1f2   :  { %1034 = vmatprep.subr.bf16.mxu0 %v1151_v48 }
 0x1f5   :  { %1035 = vmatpush3.bf16.msra.mxu0 %v553_v47 }
 0x1f6   :  { %1060 = vmatprep.subr.bf16.mxu0 %v1151_v48 }
 0x1f8   :  { %1037 = vmatmul.mubr.bf16.vlgmr.msra.gmra.mrb[16].mxu0 %v545_v50 }
 0x1f9   :  { %1076 = vmatprep.mubr.msk.bf16.mxu0 %vm1152_vm0, %v1151_v48  ;;  %1061 = vmatpush3.bf16.msra.mxu0 %v1115_v52 }
 0x1fa   :  { %1062 = vmatprep.subr.bf16.mxu0 %v1151_v48 }
 0x1fd   :  { %1063 = vmatpush3.bf16.msra.mxu0 %v1116_v53 }
 0x1fe   :  { %1064 = vmatprep.subr.bf16.mxu0 %v1151_v48 }
 0x201   :  { %1065 = vmatpush3.bf16.msra.mxu0 %v1117_v54 }
 0x202   :  { %1066 = vmatprep.subr.bf16.mxu0 %v1151_v48 }
 0x205   :  { %1067 = vmatpush3.bf16.msra.mxu0 %v1118_v55 }
 0x206   :  { %1068 = vmatprep.subr.bf16.mxu0 %v1151_v48 }
 0x209   :  { %1069 = vmatpush3.bf16.msra.mxu0 %v1119_v56 }
 0x20a   :  { %1070 = vmatprep.subr.bf16.mxu0 %v1151_v48 }
 0x20d   :  { %1071 = vmatpush3.bf16.msra.mxu0 %v1120_v57 }
 0x20e   :  { %1072 = vmatprep.subr.bf16.mxu0 %v1151_v48 }
 0x211   :  { %1073 = vmatpush3.bf16.msra.mxu0 %v1121_v63 }
 0x212   :  { %1074 = vmatprep.subr.bf16.mxu0 %v1151_v48  ;;  %v888_v48 = vld [vmem:[%s1386_s8] ss:$0 sm:$0xff]  ;;  %s1127_s8 = scalar_lea.vmem %s847_s7, 128 }
 0x213   :  { %p1128_p0 = scmp.ne.s32.totalorder %s847_s7, %s1127_s8  ;;  %p1133_p2 = scmp.lt.s32.totalorder %s1127_s8, %s1127_s8 }
 0x215   :  { %1075 = vmatpush3.bf16.msra.mxu0 %v1122_v0  ;;  %p1134_p3 = por %p1133_p2, %p1132_p1 }
 0x217   :  { %p1135_p4 = pnand %p1134_p3, %p1128_p0 }
 0x2cb   :  { %v588_v58 = vpop.f32.mrb[16].mxu0 }
 0x2cc   :  { %v599_v59 = vpack.c.bf16 %v588_v58, %v588_v58  ;;  %v1038_v60 = vpop.f32.mrb[17].mxu0 }
 0x2cd   :  { %v591_v61 = vpop.f32.mrb[18].mxu0 }
 0x2ce   :  { %v1039_v62 = vpop.f32.mrb[19].mxu0  ;;  %1057 = vmatmul.mubr.bf16.vlgmr.msra.gmra.mrb[16].mxu1 %v599_v59 }
 0x3a1   :  { %v705_v2 = vpop.f32.mrb[16].mxu1 }
 0x3a2   :  { %v706_v3 = vadd.f32 %v879_v1, %v705_v2  ;;  %v1058_v4 = vpop.f32.mrb[17].mxu1 }
 0x3a3   :  { %v708_v5 = vpop.f32.mrb[18].mxu1 }
 0x3a4   :  { %v711_v6 = vmax.f32 %v706_v3, 0.0  ;;  %v1059_v7 = vpop.f32.mrb[19].mxu1 }
 0x3a6   :  { %v712_v8 = vpack.c.bf16 %v711_v6, %v711_v6 }
 0x3a8   :  { %1077 = vmatmul.mubr.bf16.vlgmr.msra.gmra.mrb[20].mxu0 %v712_v8 }
 0x47b   :  { %v818_v11 = vpop.f32.mrb[20].mxu0 }
 0x47c   :  { %v819_v12 = vadd.f32 %v888_v48, %v818_v11  ;;  %v1078_v13 = vpop.f32.mrb[21].mxu0 }
 0x47d   :  { %v821_v14 = vpop.f32.mrb[22].mxu0 }
 0x47e   :  { %v1079_v15 = vpop.f32.mrb[23].mxu0  ;;  %v827_v16 = vsel %vm826_vm1, %v819_v12, -1e+30 }
 0x47f   :  { %828 = vmax.xlane.f32.xlu0 %v827_v16 }
 0x50c   :  { %v829_v17 = vpop.xlane.xlu0 %828 }
 0x50d   :  { %v830_v18 = vsub.f32 %v827_v16, %v829_v17 }
 0x50f   :  { %v831_v19 = vmul.f32 1.442695, %v830_v18 }
 0x511   :  { %1123 = vpow2.f32 %v831_v19 }
 0x51b   :  { %v1124_v20 = vpop.eup %1123 }
 0x51c   :  { %v833_v21 = vsel %vm826_vm1, %v1124_v20, 0.0 }
 0x51d   :  { %834 = vadd.xlane.f32.xlu0 %v833_v21 }
 0x5aa   :  { %v835_v22 = vpop.xlane.xlu0 %834 }
 0x5ab   :  { %1125 = vlog2.f32 %v835_v22 }
 0x5b5   :  { %v1126_v23 = vpop.eup %1125 }
 0x5b6   :  { %v837_v24 = vmul.f32 0.6931472, %v1126_v23 }
 0x5b8   :  { %v838_v25 = vsub.f32 %v830_v18, %v837_v24 }
 0x5ba   :  { %839 = vst [vmem:[#allocation4] sm:$0xff] %v838_v25 }
 0x5bb   :  { %1138 = shalt.err (!%p1135_p4)
}
 0x5bc   :  { %s1139_s26 = scalar_lea.hbm %s1387_s9, 128 }
 0x5bd   :  { %p1140_p5 = scmp.ne.s32.totalorder %s1387_s9, %s1139_s26  ;;  %p1143_p6 = scmp.lt.u32.totalorder %s1139_s26, %s1387_s9 }
 0x5bf   :  { %p1145_p7 = pnand %p1143_p6, %p1140_p5 }
 0x5c1   :  { %1148 = shalt.err (!%p1145_p7)
}
 0x5c2   :  { %849 = dma.vmem_to_hbm [thread:$0]  %s847_s7, 128, %s1387_s9, [#allocation5]  }
 0x5c3   :  { %1149 = dma.done.wait [#allocation5], 128  }
 0x5c4   :  { %1150 = vsyncadd [#allocation5], 4294967168 }
 0x5c5   :  { %853 = vsyncpa [#allocation5], 1 }

</bundles_post_ra>
